<compile_context>
chip_gen: v6e
topology: v6e:2x2x1
jax: 0.10.0
libtpu: 0.0.40
codegen_flags: <defaults>
</compile_context>

<pallas_src>
import math
import jax
import jax.numpy as jnp
from jax import lax
from jax.experimental import pallas as pl
from jax.experimental.pallas import tpu as pltpu

# ---- synthetic CLIP-text config (small) ------------------------------------
VOCAB  = 64          # vocab size
L      = 8           # context length (seq)
D      = 32          # transformer width
H      = 4           # attention heads
DH     = D // H      # head dim
FF     = 4 * D       # MLP hidden
LAYERS = 2           # transformer depth
EMBED  = 16          # text_projection output dim
B      = 2           # batch
EPS    = 1e-5        # LayerNorm eps
NEG    = -1e9        # additive causal-mask fill (CLIP uses -inf)
DTYPE  = jnp.float32 # clip_model.dtype


def _layer_norm(x, w, b):
    mu = jnp.mean(x, axis=-1, keepdims=True)
    var = jnp.mean((x - mu) ** 2, axis=-1, keepdims=True)
    return (x - mu) * lax.rsqrt(var + EPS) * w + b


# --------------------------- fused Pallas kernel -----------------------------

def encoder_kernel(eot_ref,                                   # scalar prefetch (SMEM)
                   x_ref, pos_ref,
                   ln1w_ref, ln1b_ref, wq_ref, bq_ref, wk_ref, bk_ref,
                   wv_ref, bv_ref, wo_ref, bo_ref,
                   ln2w_ref, ln2b_ref, w1_ref, b1_ref, w2_ref, b2_ref,
                   lnfw_ref, lnfb_ref, proj_ref,
                   o_ref,
                   x_scr):
    """Whole text-tower forward for ONE batch element (grid axis = batch)."""
    # positional add fused here (no standalone elementwise kernel)
    x = x_ref[0] + pos_ref[...]                                  # (L, D)

    # causal additive mask generated in-kernel (no per-layer mask DMA)
    row = lax.broadcasted_iota(jnp.int32, (L, L), 0)
    col = lax.broadcasted_iota(jnp.int32, (L, L), 1)
    mask = jnp.where(col <= row, 0.0, NEG).astype(jnp.float32)   # (L, L)

    for l in range(LAYERS):                                      # static unroll; x stays on-chip
        # ---- causal multi-head self-attention (head-batched, no lane slicing) ----
        xn = _layer_norm(x, ln1w_ref[l], ln1b_ref[l])            # (L, D)
        xnh = jnp.broadcast_to(xn, (H, L, D))                    # head-batch the activation
        # 1/sqrt(DH) already folded into wq/bq on the host.
        q = jnp.einsum('hld,hde->hle', xnh, wq_ref[l],
                       preferred_element_type=jnp.float32) + bq_ref[l]   # (H, L, DH)
        k = jnp.einsum('hld,hde->hle', xnh, wk_ref[l],
                       preferred_element_type=jnp.float32) + bk_ref[l]   # (H, L, DH)
        v = jnp.einsum('hld,hde->hle', xnh, wv_ref[l],
                       preferred_element_type=jnp.float32) + bv_ref[l]   # (H, L, DH)

        s = jnp.einsum('hqe,hke->hqk', q, k,
                       preferred_element_type=jnp.float32) + mask        # (H, L, L)
        # single softmax stream over all heads; exact normalization
        s = s - jnp.max(s, axis=-1, keepdims=True)
        p = jnp.exp(s)
        p = p / jnp.sum(p, axis=-1, keepdims=True)

        ctx = jnp.einsum('hqk,hke->hqe', p, v,
                         preferred_element_type=jnp.float32)             # (H, L, DH)
        # output projection: one batched contraction + head-sum (== concat @ Wo)
        attn = jnp.einsum('hqe,hed->hqd', ctx, wo_ref[l],
                          preferred_element_type=jnp.float32)            # (H, L, D)
        x = x + jnp.sum(attn, axis=0) + bo_ref[l]

        # ---- MLP: c_fc -> QuickGELU -> c_proj ----
        xn2 = _layer_norm(x, ln2w_ref[l], ln2b_ref[l])
        h1 = jnp.dot(xn2, w1_ref[l], preferred_element_type=jnp.float32) + b1_ref[l]
        h1 = h1 * jax.nn.sigmoid(1.702 * h1)                     # QuickGELU
        x = x + jnp.dot(h1, w2_ref[l], preferred_element_type=jnp.float32) + b2_ref[l]

    # ---- EOT selection (scalar prefetch) + ln_final on that row + projection ----
    x_scr[...] = x                                               # park final activations in VMEM
    eot = eot_ref[pl.program_id(0)]                              # SMEM scalar read
    sel = x_scr[pl.ds(eot, 1), :]                                # (1, D) == x[eot]
    seln = _layer_norm(sel, lnfw_ref[...], lnfb_ref[...])        # LN only on the selected row
    out = jnp.dot(seln, proj_ref[...],
                  preferred_element_type=jnp.float32)            # (1, EMBED)
    o_ref[...] = out[None].astype(o_ref.dtype)                   # (1, 1, EMBED)


# ------------------------------ wrapper --------------------------------------

def _rep(shape):
    """BlockSpec covering the full array, same block for every grid step."""
    zeros = (0,) * len(shape)
    return pl.BlockSpec(shape, lambda b, eot_r, _z=zeros: _z)


def text_encoder_forward(params, text):
    """Mirrors TextEncoder.forward(text, need_token=True)."""
    # nn.Embedding lookup + argmax — data-dependent glue in plain JAX.
    x = jnp.take(params['token_embedding'], text, axis=0).astype(DTYPE)   # (B, L, D)
    pos = params['positional_embedding'].astype(DTYPE)                    # (L, D)
    eot = jnp.argmax(text, axis=-1).astype(jnp.int32)                     # (B,) -> SMEM

    scale = 1.0 / math.sqrt(DH)

    # Repack weights head-major / "x @ W" layout, stacked over layers
    # (constant-folded under jit).
    def stk(name):
        return jnp.stack([lp[name] for lp in params['layers']])

    wqkv = stk('wqkv')                                            # (LAYERS, 3D, D) out x in
    bqkv = stk('bqkv')                                            # (LAYERS, 3D)

    def head_major(w_rows):                                       # (LAYERS, D, D) -> (LAYERS, H, D, DH)
        return jnp.transpose(w_rows.reshape(LAYERS, H, DH, D), (0, 1, 3, 2))

    wq = head_major(wqkv[:, 0 * D:1 * D]) * scale                 # scale folded into Q
    wk = head_major(wqkv[:, 1 * D:2 * D])
    wv = head_major(wqkv[:, 2 * D:3 * D])
    bq = bqkv[:, 0 * D:1 * D].reshape(LAYERS, H, 1, DH) * scale
    bk = bqkv[:, 1 * D:2 * D].reshape(LAYERS, H, 1, DH)
    bv = bqkv[:, 2 * D:3 * D].reshape(LAYERS, H, 1, DH)
    wo   = jnp.transpose(stk('wo'), (0, 2, 1)).reshape(LAYERS, H, DH, D)
    bo   = stk('bo')[:, None, :]                                  # (LAYERS, 1, D)
    ln1w = stk('ln1_w')[:, None, :]
    ln1b = stk('ln1_b')[:, None, :]
    ln2w = stk('ln2_w')[:, None, :]
    ln2b = stk('ln2_b')[:, None, :]
    w1   = jnp.transpose(stk('w1'), (0, 2, 1))                    # (LAYERS, D, FF)
    b1   = stk('b1')[:, None, :]                                  # (LAYERS, 1, FF)
    w2   = jnp.transpose(stk('w2'), (0, 2, 1))                    # (LAYERS, FF, D)
    b2   = stk('b2')[:, None, :]                                  # (LAYERS, 1, D)
    lnfw = params['ln_final_w'][None, :]                          # (1, D)
    lnfb = params['ln_final_b'][None, :]                          # (1, D)
    proj = params['text_projection']                              # (D, EMBED)

    weights = (ln1w, ln1b, wq, bq, wk, bk, wv, bv, wo, bo,
               ln2w, ln2b, w1, b1, w2, b2, lnfw, lnfb, proj)

    in_specs = [
        pl.BlockSpec((1, L, D), lambda b, eot_r: (b, 0, 0)),      # x: per-batch block
        _rep(pos.shape),                                          # pos
    ] + [_rep(w.shape) for w in weights]                          # weights: fetched once

    out = pl.pallas_call(
        encoder_kernel,
        out_shape=jax.ShapeDtypeStruct((B, 1, EMBED), DTYPE),
        grid_spec=pltpu.PrefetchScalarGridSpec(
            num_scalar_prefetch=1,                                # eot indices -> SMEM
            grid=(B,),
            in_specs=in_specs,
            out_specs=pl.BlockSpec((1, 1, EMBED), lambda b, eot_r: (b, 0, 0)),
            scratch_shapes=[pltpu.VMEM((L, D), jnp.float32)],     # final activations for EOT slice
        ),
        compiler_params=pltpu.CompilerParams(
            dimension_semantics=("parallel",)),                   # v7x: each TC takes a batch element
    )(eot, x, pos, *weights)
    return out.reshape(B, EMBED)


# --------------------- deterministic parameter init --------------------------

def init_params(key):
    ks = jax.random.split(key, 4 + LAYERS)

    def nrm(k, shape, scale=0.02):
        return (scale * jax.random.normal(k, shape)).astype(DTYPE)

    params = {
        'token_embedding': nrm(ks[0], (VOCAB, D)),
        'positional_embedding': nrm(ks[1], (L, D)),
        'ln_final_w': (1.0 + nrm(ks[2], (D,), 0.05)).astype(DTYPE),
        'ln_final_b': nrm(ks[2], (D,), 0.05),
        'text_projection': nrm(ks[3], (D, EMBED)),
        'layers': [],
    }
    for i in range(LAYERS):
        lk = jax.random.split(ks[4 + i], 10)
        params['layers'].append({
            'ln1_w': (1.0 + nrm(lk[0], (D,), 0.05)).astype(DTYPE),
            'ln1_b': nrm(lk[1], (D,), 0.05),
            'wqkv': nrm(lk[2], (3 * D, D)),
            'bqkv': nrm(lk[3], (3 * D,), 0.01),
            'wo': nrm(lk[4], (D, D)),
            'bo': nrm(lk[5], (D,), 0.01),
            'ln2_w': (1.0 + nrm(lk[6], (D,), 0.05)).astype(DTYPE),
            'ln2_b': nrm(lk[6], (D,), 0.05),
            'w1': nrm(lk[7], (FF, D)),
            'b1': nrm(lk[8], (FF,), 0.01),
            'w2': nrm(lk[9], (D, FF)),
            'b2': nrm(lk[9], (D,), 0.01),
        })
    return params


# ----------------------- pure-JAX reference (sanity) -------------------------

def reference_forward(params, text):
    x = jnp.take(params['token_embedding'], text, axis=0).astype(DTYPE)
    x = x + params['positional_embedding'][None]
    mask = jnp.triu(jnp.full((L, L), NEG, DTYPE), k=1)

    def ln(y, w, b):
        mu = y.mean(-1, keepdims=True)
        var = ((y - mu) ** 2).mean(-1, keepdims=True)
        return (y - mu) / jnp.sqrt(var + EPS) * w + b

    for lp in params['layers']:
        xn = ln(x, lp['ln1_w'], lp['ln1_b'])
        qkv = xn @ lp['wqkv'].T + lp['bqkv']
        q, k, v = jnp.split(qkv, 3, axis=-1)
        q = q.reshape(B, L, H, DH).transpose(0, 2, 1, 3) / math.sqrt(DH)
        k = k.reshape(B, L, H, DH).transpose(0, 2, 1, 3)
        v = v.reshape(B, L, H, DH).transpose(0, 2, 1, 3)
        s = q @ k.transpose(0, 1, 3, 2) + mask
        p = jax.nn.softmax(s, axis=-1)
        a = (p @ v).transpose(0, 2, 1, 3).reshape(B, L, D)
        x = x + (a @ lp['wo'].T + lp['bo'])
        xn2 = ln(x, lp['ln2_w'], lp['ln2_b'])
        h1 = xn2 @ lp['w1'].T + lp['b1']
        h1 = h1 * jax.nn.sigmoid(1.702 * h1)
        x = x + (h1 @ lp['w2'].T + lp['b2'])
    x = ln(x, params['ln_final_w'], params['ln_final_b'])
    eot = jnp.argmax(text, axis=-1)
    return x[jnp.arange(B), eot] @ params['text_projection']


# --------------------------------- main ---------------------------------------

if __name__ == "__main__":
    key = jax.random.PRNGKey(0)
    pkey, tkey = jax.random.split(key)
    params = init_params(pkey)
    # need_token=True path: `text` holds integer token ids.
    text = jax.random.randint(tkey, (B, L), 0, VOCAB, dtype=jnp.int32)

    fwd = jax.jit(lambda t: text_encoder_forward(params, t))
    out = fwd(text)
    jax.block_until_ready(out)

    ref = reference_forward(params, text)
    assert out.shape == (B, EMBED), out.shape
    max_err = float(jnp.max(jnp.abs(out - ref)))
    assert jnp.allclose(out, ref, atol=1e-3, rtol=1e-3), max_err

    print("KERNEL_OK")
</pallas_src>

<mosaic_0001>
module attributes {stable_mosaic.version = 11 : i64} {
  func.func @encoder_kernel(%arg0: i32, %arg1: memref<2xi32, #tpu.memory_space<smem>>, %arg2: memref<1x8x32xf32, #tpu.memory_space<vmem>>, %arg3: memref<8x32xf32, #tpu.memory_space<vmem>>, %arg4: memref<2x1x32xf32, #tpu.memory_space<vmem>>, %arg5: memref<2x1x32xf32, #tpu.memory_space<vmem>>, %arg6: memref<2x4x32x8xf32, #tpu.memory_space<vmem>>, %arg7: memref<2x4x1x8xf32, #tpu.memory_space<vmem>>, %arg8: memref<2x4x32x8xf32, #tpu.memory_space<vmem>>, %arg9: memref<2x4x1x8xf32, #tpu.memory_space<vmem>>, %arg10: memref<2x4x32x8xf32, #tpu.memory_space<vmem>>, %arg11: memref<2x4x1x8xf32, #tpu.memory_space<vmem>>, %arg12: memref<2x4x8x32xf32, #tpu.memory_space<vmem>>, %arg13: memref<2x1x32xf32, #tpu.memory_space<vmem>>, %arg14: memref<2x1x32xf32, #tpu.memory_space<vmem>>, %arg15: memref<2x1x32xf32, #tpu.memory_space<vmem>>, %arg16: memref<2x32x128xf32, #tpu.memory_space<vmem>>, %arg17: memref<2x1x128xf32, #tpu.memory_space<vmem>>, %arg18: memref<2x128x32xf32, #tpu.memory_space<vmem>>, %arg19: memref<2x1x32xf32, #tpu.memory_space<vmem>>, %arg20: memref<1x32xf32, #tpu.memory_space<vmem>>, %arg21: memref<1x32xf32, #tpu.memory_space<vmem>>, %arg22: memref<32x16xf32, #tpu.memory_space<vmem>>, %arg23: memref<1x1x16xf32, #tpu.memory_space<vmem>>, %arg24: memref<8x32xf32, #tpu.memory_space<vmem>>) attributes {dimension_semantics = [#tpu.dimension_semantics<parallel>], iteration_bounds = array<i64: 2>, scalar_prefetch = 1 : i64, scratch_operands = 1 : i64, tpu.core_type = #tpu.core_type<tc>, window_params = [{transform_indices = @transform_0, window_bounds = array<i64: 1, 8, 32>}, {pipeline_mode = #tpu.pipeline_mode<synchronous>, transform_indices = @transform_1, window_bounds = array<i64: 8, 32>}, {pipeline_mode = #tpu.pipeline_mode<synchronous>, transform_indices = @transform_2, window_bounds = array<i64: 2, 1, 32>}, {pipeline_mode = #tpu.pipeline_mode<synchronous>, transform_indices = @transform_3, window_bounds = array<i64: 2, 1, 32>}, {pipeline_mode = #tpu.pipeline_mode<synchronous>, transform_indices = @transform_4, window_bounds = array<i64: 2, 4, 32, 8>}, {pipeline_mode = #tpu.pipeline_mode<synchronous>, transform_indices = @transform_5, window_bounds = array<i64: 2, 4, 1, 8>}, {pipeline_mode = #tpu.pipeline_mode<synchronous>, transform_indices = @transform_6, window_bounds = array<i64: 2, 4, 32, 8>}, {pipeline_mode = #tpu.pipeline_mode<synchronous>, transform_indices = @transform_7, window_bounds = array<i64: 2, 4, 1, 8>}, {pipeline_mode = #tpu.pipeline_mode<synchronous>, transform_indices = @transform_8, window_bounds = array<i64: 2, 4, 32, 8>}, {pipeline_mode = #tpu.pipeline_mode<synchronous>, transform_indices = @transform_9, window_bounds = array<i64: 2, 4, 1, 8>}, {pipeline_mode = #tpu.pipeline_mode<synchronous>, transform_indices = @transform_10, window_bounds = array<i64: 2, 4, 8, 32>}, {pipeline_mode = #tpu.pipeline_mode<synchronous>, transform_indices = @transform_11, window_bounds = array<i64: 2, 1, 32>}, {pipeline_mode = #tpu.pipeline_mode<synchronous>, transform_indices = @transform_12, window_bounds = array<i64: 2, 1, 32>}, {pipeline_mode = #tpu.pipeline_mode<synchronous>, transform_indices = @transform_13, window_bounds = array<i64: 2, 1, 32>}, {pipeline_mode = #tpu.pipeline_mode<synchronous>, transform_indices = @transform_14, window_bounds = array<i64: 2, 32, 128>}, {pipeline_mode = #tpu.pipeline_mode<synchronous>, transform_indices = @transform_15, window_bounds = array<i64: 2, 1, 128>}, {pipeline_mode = #tpu.pipeline_mode<synchronous>, transform_indices = @transform_16, window_bounds = array<i64: 2, 128, 32>}, {pipeline_mode = #tpu.pipeline_mode<synchronous>, transform_indices = @transform_17, window_bounds = array<i64: 2, 1, 32>}, {pipeline_mode = #tpu.pipeline_mode<synchronous>, transform_indices = @transform_18, window_bounds = array<i64: 1, 32>}, {pipeline_mode = #tpu.pipeline_mode<synchronous>, transform_indices = @transform_19, window_bounds = array<i64: 1, 32>}, {pipeline_mode = #tpu.pipeline_mode<synchronous>, transform_indices = @transform_20, window_bounds = array<i64: 32, 16>}, {transform_indices = @transform_21, window_bounds = array<i64: 1, 1, 16>}]} {
    %c0 = arith.constant 0 : index
    %c0_0 = arith.constant 0 : index
    %c0_1 = arith.constant 0 : index
    %0 = vector.load %arg2[%c0, %c0_0, %c0_1] : memref<1x8x32xf32, #tpu.memory_space<vmem>>, vector<1x8x32xf32>
    %1 = vector.shape_cast %0 : vector<1x8x32xf32> to vector<8x32xf32>
    %c0_2 = arith.constant 0 : index
    %c0_3 = arith.constant 0 : index
    %2 = vector.load %arg3[%c0_2, %c0_3] : memref<8x32xf32, #tpu.memory_space<vmem>>, vector<8x32xf32>
    %3 = arith.addf %1, %2 : vector<8x32xf32>
    %4 = tpu.iota {dimensions = array<i32: 0>} : vector<8x8xi32>
    %5 = tpu.iota {dimensions = array<i32: 1>} : vector<8x8xi32>
    %6 = arith.cmpi sle, %5, %4 : vector<8x8xi32>
    %cst = arith.constant 0.000000e+00 : f32
    %cst_4 = arith.constant -1.000000e+09 : f32
    %7 = vector.broadcast %cst : f32 to vector<8x8xf32>
    %8 = vector.broadcast %cst_4 : f32 to vector<8x8xf32>
    %9 = arith.select %6, %7, %8 : vector<8x8xi1>, vector<8x8xf32>
    %c0_5 = arith.constant 0 : index
    %c0_6 = arith.constant 0 : index
    %c0_7 = arith.constant 0 : index
    %10 = vector.load %arg4[%c0_5, %c0_6, %c0_7] : memref<2x1x32xf32, #tpu.memory_space<vmem>>, vector<1x1x32xf32>
    %11 = vector.shape_cast %10 : vector<1x1x32xf32> to vector<1x32xf32>
    %c0_8 = arith.constant 0 : index
    %c0_9 = arith.constant 0 : index
    %c0_10 = arith.constant 0 : index
    %12 = vector.load %arg5[%c0_8, %c0_9, %c0_10] : memref<2x1x32xf32, #tpu.memory_space<vmem>>, vector<1x1x32xf32>
    %13 = vector.shape_cast %12 : vector<1x1x32xf32> to vector<1x32xf32>
    %cst_11 = arith.constant dense<0.000000e+00> : vector<8xf32>
    %14 = vector.multi_reduction <add>, %3, %cst_11 [1] : vector<8x32xf32> to vector<8xf32>
    %15 = vector.shape_cast %14 : vector<8xf32> to vector<8x1xf32>
    %cst_12 = arith.constant 3.200000e+01 : f32
    %16 = vector.broadcast %cst_12 : f32 to vector<8x1xf32>
    %17 = arith.divf %15, %16 : vector<8x1xf32>
    %18 = vector.broadcast %17 : vector<8x1xf32> to vector<8x32xf32>
    %19 = arith.subf %3, %18 : vector<8x32xf32>
    %20 = arith.mulf %19, %19 : vector<8x32xf32>
    %cst_13 = arith.constant dense<0.000000e+00> : vector<8xf32>
    %21 = vector.multi_reduction <add>, %20, %cst_13 [1] : vector<8x32xf32> to vector<8xf32>
    %22 = vector.shape_cast %21 : vector<8xf32> to vector<8x1xf32>
    %cst_14 = arith.constant 3.200000e+01 : f32
    %23 = vector.broadcast %cst_14 : f32 to vector<8x1xf32>
    %24 = arith.divf %22, %23 : vector<8x1xf32>
    %25 = vector.broadcast %17 : vector<8x1xf32> to vector<8x32xf32>
    %26 = arith.subf %3, %25 : vector<8x32xf32>
    %cst_15 = arith.constant 9.99999974E-6 : f32
    %27 = vector.broadcast %cst_15 : f32 to vector<8x1xf32>
    %28 = arith.addf %24, %27 : vector<8x1xf32>
    %29 = math.rsqrt %28 : vector<8x1xf32>
    %30 = vector.broadcast %29 : vector<8x1xf32> to vector<8x32xf32>
    %31 = arith.mulf %26, %30 : vector<8x32xf32>
    %32 = vector.broadcast %11 : vector<1x32xf32> to vector<8x32xf32>
    %33 = arith.mulf %31, %32 : vector<8x32xf32>
    %34 = vector.broadcast %13 : vector<1x32xf32> to vector<8x32xf32>
    %35 = arith.addf %33, %34 : vector<8x32xf32>
    %36 = vector.shape_cast %35 : vector<8x32xf32> to vector<1x8x32xf32>
    %37 = vector.broadcast %36 : vector<1x8x32xf32> to vector<4x8x32xf32>
    %c0_16 = arith.constant 0 : index
    %c0_17 = arith.constant 0 : index
    %c0_18 = arith.constant 0 : index
    %c0_19 = arith.constant 0 : index
    %38 = vector.load %arg6[%c0_16, %c0_17, %c0_18, %c0_19] : memref<2x4x32x8xf32, #tpu.memory_space<vmem>>, vector<1x4x32x8xf32>
    %39 = vector.shape_cast %38 : vector<1x4x32x8xf32> to vector<4x32x8xf32>
    "tpu.trace_start"() <{level = 10 : i32, message = "hld,hde->hle"}> : () -> ()
    %cst_20 = arith.constant dense<0.000000e+00> : vector<4x8x8xf32>
    %40 = tpu.matmul %37, %39, %cst_20 {dimension_numbers = #tpu.dot_dimension_numbers<[2], [1], [1], [2], [0, 0, 0, 1, 1, 2], [0], [0]>} : vector<4x8x32xf32>, vector<4x32x8xf32>, vector<4x8x8xf32> -> vector<4x8x8xf32>
    "tpu.trace_stop"() : () -> ()
    %c0_21 = arith.constant 0 : index
    %c0_22 = arith.constant 0 : index
    %c0_23 = arith.constant 0 : index
    %c0_24 = arith.constant 0 : index
    %41 = vector.load %arg7[%c0_21, %c0_22, %c0_23, %c0_24] : memref<2x4x1x8xf32, #tpu.memory_space<vmem>>, vector<1x4x1x8xf32>
    %42 = vector.shape_cast %41 : vector<1x4x1x8xf32> to vector<4x1x8xf32>
    %43 = vector.broadcast %42 : vector<4x1x8xf32> to vector<4x8x8xf32>
    %44 = arith.addf %40, %43 : vector<4x8x8xf32>
    %c0_25 = arith.constant 0 : index
    %c0_26 = arith.constant 0 : index
    %c0_27 = arith.constant 0 : index
    %c0_28 = arith.constant 0 : index
    %45 = vector.load %arg8[%c0_25, %c0_26, %c0_27, %c0_28] : memref<2x4x32x8xf32, #tpu.memory_space<vmem>>, vector<1x4x32x8xf32>
    %46 = vector.shape_cast %45 : vector<1x4x32x8xf32> to vector<4x32x8xf32>
    "tpu.trace_start"() <{level = 10 : i32, message = "hld,hde->hle"}> : () -> ()
    %cst_29 = arith.constant dense<0.000000e+00> : vector<4x8x8xf32>
    %47 = tpu.matmul %37, %46, %cst_29 {dimension_numbers = #tpu.dot_dimension_numbers<[2], [1], [1], [2], [0, 0, 0, 1, 1, 2], [0], [0]>} : vector<4x8x32xf32>, vector<4x32x8xf32>, vector<4x8x8xf32> -> vector<4x8x8xf32>
    "tpu.trace_stop"() : () -> ()
    %c0_30 = arith.constant 0 : index
    %c0_31 = arith.constant 0 : index
    %c0_32 = arith.constant 0 : index
    %c0_33 = arith.constant 0 : index
    %48 = vector.load %arg9[%c0_30, %c0_31, %c0_32, %c0_33] : memref<2x4x1x8xf32, #tpu.memory_space<vmem>>, vector<1x4x1x8xf32>
    %49 = vector.shape_cast %48 : vector<1x4x1x8xf32> to vector<4x1x8xf32>
    %50 = vector.broadcast %49 : vector<4x1x8xf32> to vector<4x8x8xf32>
    %51 = arith.addf %47, %50 : vector<4x8x8xf32>
    %c0_34 = arith.constant 0 : index
    %c0_35 = arith.constant 0 : index
    %c0_36 = arith.constant 0 : index
    %c0_37 = arith.constant 0 : index
    %52 = vector.load %arg10[%c0_34, %c0_35, %c0_36, %c0_37] : memref<2x4x32x8xf32, #tpu.memory_space<vmem>>, vector<1x4x32x8xf32>
    %53 = vector.shape_cast %52 : vector<1x4x32x8xf32> to vector<4x32x8xf32>
    "tpu.trace_start"() <{level = 10 : i32, message = "hld,hde->hle"}> : () -> ()
    %cst_38 = arith.constant dense<0.000000e+00> : vector<4x8x8xf32>
    %54 = tpu.matmul %37, %53, %cst_38 {dimension_numbers = #tpu.dot_dimension_numbers<[2], [1], [1], [2], [0, 0, 0, 1, 1, 2], [0], [0]>} : vector<4x8x32xf32>, vector<4x32x8xf32>, vector<4x8x8xf32> -> vector<4x8x8xf32>
    "tpu.trace_stop"() : () -> ()
    %c0_39 = arith.constant 0 : index
    %c0_40 = arith.constant 0 : index
    %c0_41 = arith.constant 0 : index
    %c0_42 = arith.constant 0 : index
    %55 = vector.load %arg11[%c0_39, %c0_40, %c0_41, %c0_42] : memref<2x4x1x8xf32, #tpu.memory_space<vmem>>, vector<1x4x1x8xf32>
    %56 = vector.shape_cast %55 : vector<1x4x1x8xf32> to vector<4x1x8xf32>
    %57 = vector.broadcast %56 : vector<4x1x8xf32> to vector<4x8x8xf32>
    %58 = arith.addf %54, %57 : vector<4x8x8xf32>
    "tpu.trace_start"() <{level = 10 : i32, message = "hqe,hke->hqk"}> : () -> ()
    %cst_43 = arith.constant dense<0.000000e+00> : vector<4x8x8xf32>
    %59 = tpu.matmul %44, %51, %cst_43 {dimension_numbers = #tpu.dot_dimension_numbers<[2], [2], [1], [1], [0, 0, 0, 1, 1, 1], [0], [0]>} : vector<4x8x8xf32>, vector<4x8x8xf32>, vector<4x8x8xf32> -> vector<4x8x8xf32>
    "tpu.trace_stop"() : () -> ()
    %60 = vector.shape_cast %9 : vector<8x8xf32> to vector<1x8x8xf32>
    %61 = vector.broadcast %60 : vector<1x8x8xf32> to vector<4x8x8xf32>
    %62 = arith.addf %59, %61 : vector<4x8x8xf32>
    %cst_44 = arith.constant dense<0xFF800000> : vector<4x8xf32>
    %63 = vector.multi_reduction <maximumf>, %62, %cst_44 [2] : vector<4x8x8xf32> to vector<4x8xf32>
    %64 = vector.shape_cast %63 : vector<4x8xf32> to vector<4x8x1xf32>
    %65 = vector.broadcast %64 : vector<4x8x1xf32> to vector<4x8x8xf32>
    %66 = arith.subf %62, %65 : vector<4x8x8xf32>
    %67 = math.exp %66 : vector<4x8x8xf32>
    %cst_45 = arith.constant dense<0.000000e+00> : vector<4x8xf32>
    %68 = vector.multi_reduction <add>, %67, %cst_45 [2] : vector<4x8x8xf32> to vector<4x8xf32>
    %69 = vector.shape_cast %68 : vector<4x8xf32> to vector<4x8x1xf32>
    %70 = vector.broadcast %69 : vector<4x8x1xf32> to vector<4x8x8xf32>
    %71 = arith.divf %67, %70 : vector<4x8x8xf32>
    "tpu.trace_start"() <{level = 10 : i32, message = "hqk,hke->hqe"}> : () -> ()
    %cst_46 = arith.constant dense<0.000000e+00> : vector<4x8x8xf32>
    %72 = tpu.matmul %71, %58, %cst_46 {dimension_numbers = #tpu.dot_dimension_numbers<[2], [1], [1], [2], [0, 0, 0, 1, 1, 2], [0], [0]>} : vector<4x8x8xf32>, vector<4x8x8xf32>, vector<4x8x8xf32> -> vector<4x8x8xf32>
    "tpu.trace_stop"() : () -> ()
    %c0_47 = arith.constant 0 : index
    %c0_48 = arith.constant 0 : index
    %c0_49 = arith.constant 0 : index
    %c0_50 = arith.constant 0 : index
    %73 = vector.load %arg12[%c0_47, %c0_48, %c0_49, %c0_50] : memref<2x4x8x32xf32, #tpu.memory_space<vmem>>, vector<1x4x8x32xf32>
    %74 = vector.shape_cast %73 : vector<1x4x8x32xf32> to vector<4x8x32xf32>
    "tpu.trace_start"() <{level = 10 : i32, message = "hqe,hed->hqd"}> : () -> ()
    %cst_51 = arith.constant dense<0.000000e+00> : vector<4x8x32xf32>
    %75 = tpu.matmul %72, %74, %cst_51 {dimension_numbers = #tpu.dot_dimension_numbers<[2], [1], [1], [2], [0, 0, 0, 1, 1, 2], [0], [0]>} : vector<4x8x8xf32>, vector<4x8x32xf32>, vector<4x8x32xf32> -> vector<4x8x32xf32>
    "tpu.trace_stop"() : () -> ()
    %cst_52 = arith.constant dense<0.000000e+00> : vector<8x32xf32>
    %76 = vector.multi_reduction <add>, %75, %cst_52 [0] : vector<4x8x32xf32> to vector<8x32xf32>
    %77 = arith.addf %3, %76 : vector<8x32xf32>
    %c0_53 = arith.constant 0 : index
    %c0_54 = arith.constant 0 : index
    %c0_55 = arith.constant 0 : index
    %78 = vector.load %arg13[%c0_53, %c0_54, %c0_55] : memref<2x1x32xf32, #tpu.memory_space<vmem>>, vector<1x1x32xf32>
    %79 = vector.shape_cast %78 : vector<1x1x32xf32> to vector<1x32xf32>
    %80 = vector.broadcast %79 : vector<1x32xf32> to vector<8x32xf32>
    %81 = arith.addf %77, %80 : vector<8x32xf32>
    %c0_56 = arith.constant 0 : index
    %c0_57 = arith.constant 0 : index
    %c0_58 = arith.constant 0 : index
    %82 = vector.load %arg14[%c0_56, %c0_57, %c0_58] : memref<2x1x32xf32, #tpu.memory_space<vmem>>, vector<1x1x32xf32>
    %83 = vector.shape_cast %82 : vector<1x1x32xf32> to vector<1x32xf32>
    %c0_59 = arith.constant 0 : index
    %c0_60 = arith.constant 0 : index
    %c0_61 = arith.constant 0 : index
    %84 = vector.load %arg15[%c0_59, %c0_60, %c0_61] : memref<2x1x32xf32, #tpu.memory_space<vmem>>, vector<1x1x32xf32>
    %85 = vector.shape_cast %84 : vector<1x1x32xf32> to vector<1x32xf32>
    %cst_62 = arith.constant dense<0.000000e+00> : vector<8xf32>
    %86 = vector.multi_reduction <add>, %81, %cst_62 [1] : vector<8x32xf32> to vector<8xf32>
    %87 = vector.shape_cast %86 : vector<8xf32> to vector<8x1xf32>
    %cst_63 = arith.constant 3.200000e+01 : f32
    %88 = vector.broadcast %cst_63 : f32 to vector<8x1xf32>
    %89 = arith.divf %87, %88 : vector<8x1xf32>
    %90 = vector.broadcast %89 : vector<8x1xf32> to vector<8x32xf32>
    %91 = arith.subf %81, %90 : vector<8x32xf32>
    %92 = arith.mulf %91, %91 : vector<8x32xf32>
    %cst_64 = arith.constant dense<0.000000e+00> : vector<8xf32>
    %93 = vector.multi_reduction <add>, %92, %cst_64 [1] : vector<8x32xf32> to vector<8xf32>
    %94 = vector.shape_cast %93 : vector<8xf32> to vector<8x1xf32>
    %cst_65 = arith.constant 3.200000e+01 : f32
    %95 = vector.broadcast %cst_65 : f32 to vector<8x1xf32>
    %96 = arith.divf %94, %95 : vector<8x1xf32>
    %97 = vector.broadcast %89 : vector<8x1xf32> to vector<8x32xf32>
    %98 = arith.subf %81, %97 : vector<8x32xf32>
    %cst_66 = arith.constant 9.99999974E-6 : f32
    %99 = vector.broadcast %cst_66 : f32 to vector<8x1xf32>
    %100 = arith.addf %96, %99 : vector<8x1xf32>
    %101 = math.rsqrt %100 : vector<8x1xf32>
    %102 = vector.broadcast %101 : vector<8x1xf32> to vector<8x32xf32>
    %103 = arith.mulf %98, %102 : vector<8x32xf32>
    %104 = vector.broadcast %83 : vector<1x32xf32> to vector<8x32xf32>
    %105 = arith.mulf %103, %104 : vector<8x32xf32>
    %106 = vector.broadcast %85 : vector<1x32xf32> to vector<8x32xf32>
    %107 = arith.addf %105, %106 : vector<8x32xf32>
    %c0_67 = arith.constant 0 : index
    %c0_68 = arith.constant 0 : index
    %c0_69 = arith.constant 0 : index
    %108 = vector.load %arg16[%c0_67, %c0_68, %c0_69] : memref<2x32x128xf32, #tpu.memory_space<vmem>>, vector<1x32x128xf32>
    %109 = vector.shape_cast %108 : vector<1x32x128xf32> to vector<32x128xf32>
    %cst_70 = arith.constant dense<0.000000e+00> : vector<8x128xf32>
    %110 = tpu.matmul %107, %109, %cst_70 {dimension_numbers = #tpu.dot_dimension_numbers<[1], [0], [0], [1], [0, 0, 1, 1], [], []>} : vector<8x32xf32>, vector<32x128xf32>, vector<8x128xf32> -> vector<8x128xf32>
    %c0_71 = arith.constant 0 : index
    %c0_72 = arith.constant 0 : index
    %c0_73 = arith.constant 0 : index
    %111 = vector.load %arg17[%c0_71, %c0_72, %c0_73] : memref<2x1x128xf32, #tpu.memory_space<vmem>>, vector<1x1x128xf32>
    %112 = vector.shape_cast %111 : vector<1x1x128xf32> to vector<1x128xf32>
    %113 = vector.broadcast %112 : vector<1x128xf32> to vector<8x128xf32>
    %114 = arith.addf %110, %113 : vector<8x128xf32>
    %cst_74 = arith.constant 1.702000e+00 : f32
    %115 = vector.broadcast %cst_74 : f32 to vector<8x128xf32>
    %116 = arith.mulf %115, %114 : vector<8x128xf32>
    %117 = arith.negf %116 : vector<8x128xf32>
    %118 = math.exp %117 : vector<8x128xf32>
    %cst_75 = arith.constant 1.000000e+00 : f32
    %119 = vector.broadcast %cst_75 : f32 to vector<8x128xf32>
    %120 = arith.addf %119, %118 : vector<8x128xf32>
    %121 = arith.divf %119, %120 : vector<8x128xf32>
    %122 = arith.mulf %114, %121 : vector<8x128xf32>
    %c0_76 = arith.constant 0 : index
    %c0_77 = arith.constant 0 : index
    %c0_78 = arith.constant 0 : index
    %123 = vector.load %arg18[%c0_76, %c0_77, %c0_78] : memref<2x128x32xf32, #tpu.memory_space<vmem>>, vector<1x128x32xf32>
    %124 = vector.shape_cast %123 : vector<1x128x32xf32> to vector<128x32xf32>
    %cst_79 = arith.constant dense<0.000000e+00> : vector<8x32xf32>
    %125 = tpu.matmul %122, %124, %cst_79 {dimension_numbers = #tpu.dot_dimension_numbers<[1], [0], [0], [1], [0, 0, 1, 1], [], []>} : vector<8x128xf32>, vector<128x32xf32>, vector<8x32xf32> -> vector<8x32xf32>
    %126 = arith.addf %81, %125 : vector<8x32xf32>
    %c0_80 = arith.constant 0 : index
    %c0_81 = arith.constant 0 : index
    %c0_82 = arith.constant 0 : index
    %127 = vector.load %arg19[%c0_80, %c0_81, %c0_82] : memref<2x1x32xf32, #tpu.memory_space<vmem>>, vector<1x1x32xf32>
    %128 = vector.shape_cast %127 : vector<1x1x32xf32> to vector<1x32xf32>
    %129 = vector.broadcast %128 : vector<1x32xf32> to vector<8x32xf32>
    %130 = arith.addf %126, %129 : vector<8x32xf32>
    %c1 = arith.constant 1 : index
    %c0_83 = arith.constant 0 : index
    %c0_84 = arith.constant 0 : index
    %131 = vector.load %arg4[%c1, %c0_83, %c0_84] : memref<2x1x32xf32, #tpu.memory_space<vmem>>, vector<1x1x32xf32>
    %132 = vector.shape_cast %131 : vector<1x1x32xf32> to vector<1x32xf32>
    %c1_85 = arith.constant 1 : index
    %c0_86 = arith.constant 0 : index
    %c0_87 = arith.constant 0 : index
    %133 = vector.load %arg5[%c1_85, %c0_86, %c0_87] : memref<2x1x32xf32, #tpu.memory_space<vmem>>, vector<1x1x32xf32>
    %134 = vector.shape_cast %133 : vector<1x1x32xf32> to vector<1x32xf32>
    %cst_88 = arith.constant dense<0.000000e+00> : vector<8xf32>
    %135 = vector.multi_reduction <add>, %130, %cst_88 [1] : vector<8x32xf32> to vector<8xf32>
    %136 = vector.shape_cast %135 : vector<8xf32> to vector<8x1xf32>
    %cst_89 = arith.constant 3.200000e+01 : f32
    %137 = vector.broadcast %cst_89 : f32 to vector<8x1xf32>
    %138 = arith.divf %136, %137 : vector<8x1xf32>
    %139 = vector.broadcast %138 : vector<8x1xf32> to vector<8x32xf32>
    %140 = arith.subf %130, %139 : vector<8x32xf32>
    %141 = arith.mulf %140, %140 : vector<8x32xf32>
    %cst_90 = arith.constant dense<0.000000e+00> : vector<8xf32>
    %142 = vector.multi_reduction <add>, %141, %cst_90 [1] : vector<8x32xf32> to vector<8xf32>
    %143 = vector.shape_cast %142 : vector<8xf32> to vector<8x1xf32>
    %cst_91 = arith.constant 3.200000e+01 : f32
    %144 = vector.broadcast %cst_91 : f32 to vector<8x1xf32>
    %145 = arith.divf %143, %144 : vector<8x1xf32>
    %146 = vector.broadcast %138 : vector<8x1xf32> to vector<8x32xf32>
    %147 = arith.subf %130, %146 : vector<8x32xf32>
    %cst_92 = arith.constant 9.99999974E-6 : f32
    %148 = vector.broadcast %cst_92 : f32 to vector<8x1xf32>
    %149 = arith.addf %145, %148 : vector<8x1xf32>
    %150 = math.rsqrt %149 : vector<8x1xf32>
    %151 = vector.broadcast %150 : vector<8x1xf32> to vector<8x32xf32>
    %152 = arith.mulf %147, %151 : vector<8x32xf32>
    %153 = vector.broadcast %132 : vector<1x32xf32> to vector<8x32xf32>
    %154 = arith.mulf %152, %153 : vector<8x32xf32>
    %155 = vector.broadcast %134 : vector<1x32xf32> to vector<8x32xf32>
    %156 = arith.addf %154, %155 : vector<8x32xf32>
    %157 = vector.shape_cast %156 : vector<8x32xf32> to vector<1x8x32xf32>
    %158 = vector.broadcast %157 : vector<1x8x32xf32> to vector<4x8x32xf32>
    %c1_93 = arith.constant 1 : index
    %c0_94 = arith.constant 0 : index
    %c0_95 = arith.constant 0 : index
    %c0_96 = arith.constant 0 : index
    %159 = vector.load %arg6[%c1_93, %c0_94, %c0_95, %c0_96] : memref<2x4x32x8xf32, #tpu.memory_space<vmem>>, vector<1x4x32x8xf32>
    %160 = vector.shape_cast %159 : vector<1x4x32x8xf32> to vector<4x32x8xf32>
    "tpu.trace_start"() <{level = 10 : i32, message = "hld,hde->hle"}> : () -> ()
    %cst_97 = arith.constant dense<0.000000e+00> : vector<4x8x8xf32>
    %161 = tpu.matmul %158, %160, %cst_97 {dimension_numbers = #tpu.dot_dimension_numbers<[2], [1], [1], [2], [0, 0, 0, 1, 1, 2], [0], [0]>} : vector<4x8x32xf32>, vector<4x32x8xf32>, vector<4x8x8xf32> -> vector<4x8x8xf32>
    "tpu.trace_stop"() : () -> ()
    %c1_98 = arith.constant 1 : index
    %c0_99 = arith.constant 0 : index
    %c0_100 = arith.constant 0 : index
    %c0_101 = arith.constant 0 : index
    %162 = vector.load %arg7[%c1_98, %c0_99, %c0_100, %c0_101] : memref<2x4x1x8xf32, #tpu.memory_space<vmem>>, vector<1x4x1x8xf32>
    %163 = vector.shape_cast %162 : vector<1x4x1x8xf32> to vector<4x1x8xf32>
    %164 = vector.broadcast %163 : vector<4x1x8xf32> to vector<4x8x8xf32>
    %165 = arith.addf %161, %164 : vector<4x8x8xf32>
    %c1_102 = arith.constant 1 : index
    %c0_103 = arith.constant 0 : index
    %c0_104 = arith.constant 0 : index
    %c0_105 = arith.constant 0 : index
    %166 = vector.load %arg8[%c1_102, %c0_103, %c0_104, %c0_105] : memref<2x4x32x8xf32, #tpu.memory_space<vmem>>, vector<1x4x32x8xf32>
    %167 = vector.shape_cast %166 : vector<1x4x32x8xf32> to vector<4x32x8xf32>
    "tpu.trace_start"() <{level = 10 : i32, message = "hld,hde->hle"}> : () -> ()
    %cst_106 = arith.constant dense<0.000000e+00> : vector<4x8x8xf32>
    %168 = tpu.matmul %158, %167, %cst_106 {dimension_numbers = #tpu.dot_dimension_numbers<[2], [1], [1], [2], [0, 0, 0, 1, 1, 2], [0], [0]>} : vector<4x8x32xf32>, vector<4x32x8xf32>, vector<4x8x8xf32> -> vector<4x8x8xf32>
    "tpu.trace_stop"() : () -> ()
    %c1_107 = arith.constant 1 : index
    %c0_108 = arith.constant 0 : index
    %c0_109 = arith.constant 0 : index
    %c0_110 = arith.constant 0 : index
    %169 = vector.load %arg9[%c1_107, %c0_108, %c0_109, %c0_110] : memref<2x4x1x8xf32, #tpu.memory_space<vmem>>, vector<1x4x1x8xf32>
    %170 = vector.shape_cast %169 : vector<1x4x1x8xf32> to vector<4x1x8xf32>
    %171 = vector.broadcast %170 : vector<4x1x8xf32> to vector<4x8x8xf32>
    %172 = arith.addf %168, %171 : vector<4x8x8xf32>
    %c1_111 = arith.constant 1 : index
    %c0_112 = arith.constant 0 : index
    %c0_113 = arith.constant 0 : index
    %c0_114 = arith.constant 0 : index
    %173 = vector.load %arg10[%c1_111, %c0_112, %c0_113, %c0_114] : memref<2x4x32x8xf32, #tpu.memory_space<vmem>>, vector<1x4x32x8xf32>
    %174 = vector.shape_cast %173 : vector<1x4x32x8xf32> to vector<4x32x8xf32>
    "tpu.trace_start"() <{level = 10 : i32, message = "hld,hde->hle"}> : () -> ()
    %cst_115 = arith.constant dense<0.000000e+00> : vector<4x8x8xf32>
    %175 = tpu.matmul %158, %174, %cst_115 {dimension_numbers = #tpu.dot_dimension_numbers<[2], [1], [1], [2], [0, 0, 0, 1, 1, 2], [0], [0]>} : vector<4x8x32xf32>, vector<4x32x8xf32>, vector<4x8x8xf32> -> vector<4x8x8xf32>
    "tpu.trace_stop"() : () -> ()
    %c1_116 = arith.constant 1 : index
    %c0_117 = arith.constant 0 : index
    %c0_118 = arith.constant 0 : index
    %c0_119 = arith.constant 0 : index
    %176 = vector.load %arg11[%c1_116, %c0_117, %c0_118, %c0_119] : memref<2x4x1x8xf32, #tpu.memory_space<vmem>>, vector<1x4x1x8xf32>
    %177 = vector.shape_cast %176 : vector<1x4x1x8xf32> to vector<4x1x8xf32>
    %178 = vector.broadcast %177 : vector<4x1x8xf32> to vector<4x8x8xf32>
    %179 = arith.addf %175, %178 : vector<4x8x8xf32>
    "tpu.trace_start"() <{level = 10 : i32, message = "hqe,hke->hqk"}> : () -> ()
    %cst_120 = arith.constant dense<0.000000e+00> : vector<4x8x8xf32>
    %180 = tpu.matmul %165, %172, %cst_120 {dimension_numbers = #tpu.dot_dimension_numbers<[2], [2], [1], [1], [0, 0, 0, 1, 1, 1], [0], [0]>} : vector<4x8x8xf32>, vector<4x8x8xf32>, vector<4x8x8xf32> -> vector<4x8x8xf32>
    "tpu.trace_stop"() : () -> ()
    %181 = vector.shape_cast %9 : vector<8x8xf32> to vector<1x8x8xf32>
    %182 = vector.broadcast %181 : vector<1x8x8xf32> to vector<4x8x8xf32>
    %183 = arith.addf %180, %182 : vector<4x8x8xf32>
    %cst_121 = arith.constant dense<0xFF800000> : vector<4x8xf32>
    %184 = vector.multi_reduction <maximumf>, %183, %cst_121 [2] : vector<4x8x8xf32> to vector<4x8xf32>
    %185 = vector.shape_cast %184 : vector<4x8xf32> to vector<4x8x1xf32>
    %186 = vector.broadcast %185 : vector<4x8x1xf32> to vector<4x8x8xf32>
    %187 = arith.subf %183, %186 : vector<4x8x8xf32>
    %188 = math.exp %187 : vector<4x8x8xf32>
    %cst_122 = arith.constant dense<0.000000e+00> : vector<4x8xf32>
    %189 = vector.multi_reduction <add>, %188, %cst_122 [2] : vector<4x8x8xf32> to vector<4x8xf32>
    %190 = vector.shape_cast %189 : vector<4x8xf32> to vector<4x8x1xf32>
    %191 = vector.broadcast %190 : vector<4x8x1xf32> to vector<4x8x8xf32>
    %192 = arith.divf %188, %191 : vector<4x8x8xf32>
    "tpu.trace_start"() <{level = 10 : i32, message = "hqk,hke->hqe"}> : () -> ()
    %cst_123 = arith.constant dense<0.000000e+00> : vector<4x8x8xf32>
    %193 = tpu.matmul %192, %179, %cst_123 {dimension_numbers = #tpu.dot_dimension_numbers<[2], [1], [1], [2], [0, 0, 0, 1, 1, 2], [0], [0]>} : vector<4x8x8xf32>, vector<4x8x8xf32>, vector<4x8x8xf32> -> vector<4x8x8xf32>
    "tpu.trace_stop"() : () -> ()
    %c1_124 = arith.constant 1 : index
    %c0_125 = arith.constant 0 : index
    %c0_126 = arith.constant 0 : index
    %c0_127 = arith.constant 0 : index
    %194 = vector.load %arg12[%c1_124, %c0_125, %c0_126, %c0_127] : memref<2x4x8x32xf32, #tpu.memory_space<vmem>>, vector<1x4x8x32xf32>
    %195 = vector.shape_cast %194 : vector<1x4x8x32xf32> to vector<4x8x32xf32>
    "tpu.trace_start"() <{level = 10 : i32, message = "hqe,hed->hqd"}> : () -> ()
    %cst_128 = arith.constant dense<0.000000e+00> : vector<4x8x32xf32>
    %196 = tpu.matmul %193, %195, %cst_128 {dimension_numbers = #tpu.dot_dimension_numbers<[2], [1], [1], [2], [0, 0, 0, 1, 1, 2], [0], [0]>} : vector<4x8x8xf32>, vector<4x8x32xf32>, vector<4x8x32xf32> -> vector<4x8x32xf32>
    "tpu.trace_stop"() : () -> ()
    %cst_129 = arith.constant dense<0.000000e+00> : vector<8x32xf32>
    %197 = vector.multi_reduction <add>, %196, %cst_129 [0] : vector<4x8x32xf32> to vector<8x32xf32>
    %198 = arith.addf %130, %197 : vector<8x32xf32>
    %c1_130 = arith.constant 1 : index
    %c0_131 = arith.constant 0 : index
    %c0_132 = arith.constant 0 : index
    %199 = vector.load %arg13[%c1_130, %c0_131, %c0_132] : memref<2x1x32xf32, #tpu.memory_space<vmem>>, vector<1x1x32xf32>
    %200 = vector.shape_cast %199 : vector<1x1x32xf32> to vector<1x32xf32>
    %201 = vector.broadcast %200 : vector<1x32xf32> to vector<8x32xf32>
    %202 = arith.addf %198, %201 : vector<8x32xf32>
    %c1_133 = arith.constant 1 : index
    %c0_134 = arith.constant 0 : index
    %c0_135 = arith.constant 0 : index
    %203 = vector.load %arg14[%c1_133, %c0_134, %c0_135] : memref<2x1x32xf32, #tpu.memory_space<vmem>>, vector<1x1x32xf32>
    %204 = vector.shape_cast %203 : vector<1x1x32xf32> to vector<1x32xf32>
    %c1_136 = arith.constant 1 : index
    %c0_137 = arith.constant 0 : index
    %c0_138 = arith.constant 0 : index
    %205 = vector.load %arg15[%c1_136, %c0_137, %c0_138] : memref<2x1x32xf32, #tpu.memory_space<vmem>>, vector<1x1x32xf32>
    %206 = vector.shape_cast %205 : vector<1x1x32xf32> to vector<1x32xf32>
    %cst_139 = arith.constant dense<0.000000e+00> : vector<8xf32>
    %207 = vector.multi_reduction <add>, %202, %cst_139 [1] : vector<8x32xf32> to vector<8xf32>
    %208 = vector.shape_cast %207 : vector<8xf32> to vector<8x1xf32>
    %cst_140 = arith.constant 3.200000e+01 : f32
    %209 = vector.broadcast %cst_140 : f32 to vector<8x1xf32>
    %210 = arith.divf %208, %209 : vector<8x1xf32>
    %211 = vector.broadcast %210 : vector<8x1xf32> to vector<8x32xf32>
    %212 = arith.subf %202, %211 : vector<8x32xf32>
    %213 = arith.mulf %212, %212 : vector<8x32xf32>
    %cst_141 = arith.constant dense<0.000000e+00> : vector<8xf32>
    %214 = vector.multi_reduction <add>, %213, %cst_141 [1] : vector<8x32xf32> to vector<8xf32>
    %215 = vector.shape_cast %214 : vector<8xf32> to vector<8x1xf32>
    %cst_142 = arith.constant 3.200000e+01 : f32
    %216 = vector.broadcast %cst_142 : f32 to vector<8x1xf32>
    %217 = arith.divf %215, %216 : vector<8x1xf32>
    %218 = vector.broadcast %210 : vector<8x1xf32> to vector<8x32xf32>
    %219 = arith.subf %202, %218 : vector<8x32xf32>
    %cst_143 = arith.constant 9.99999974E-6 : f32
    %220 = vector.broadcast %cst_143 : f32 to vector<8x1xf32>
    %221 = arith.addf %217, %220 : vector<8x1xf32>
    %222 = math.rsqrt %221 : vector<8x1xf32>
    %223 = vector.broadcast %222 : vector<8x1xf32> to vector<8x32xf32>
    %224 = arith.mulf %219, %223 : vector<8x32xf32>
    %225 = vector.broadcast %204 : vector<1x32xf32> to vector<8x32xf32>
    %226 = arith.mulf %224, %225 : vector<8x32xf32>
    %227 = vector.broadcast %206 : vector<1x32xf32> to vector<8x32xf32>
    %228 = arith.addf %226, %227 : vector<8x32xf32>
    %c1_144 = arith.constant 1 : index
    %c0_145 = arith.constant 0 : index
    %c0_146 = arith.constant 0 : index
    %229 = vector.load %arg16[%c1_144, %c0_145, %c0_146] : memref<2x32x128xf32, #tpu.memory_space<vmem>>, vector<1x32x128xf32>
    %230 = vector.shape_cast %229 : vector<1x32x128xf32> to vector<32x128xf32>
    %cst_147 = arith.constant dense<0.000000e+00> : vector<8x128xf32>
    %231 = tpu.matmul %228, %230, %cst_147 {dimension_numbers = #tpu.dot_dimension_numbers<[1], [0], [0], [1], [0, 0, 1, 1], [], []>} : vector<8x32xf32>, vector<32x128xf32>, vector<8x128xf32> -> vector<8x128xf32>
    %c1_148 = arith.constant 1 : index
    %c0_149 = arith.constant 0 : index
    %c0_150 = arith.constant 0 : index
    %232 = vector.load %arg17[%c1_148, %c0_149, %c0_150] : memref<2x1x128xf32, #tpu.memory_space<vmem>>, vector<1x1x128xf32>
    %233 = vector.shape_cast %232 : vector<1x1x128xf32> to vector<1x128xf32>
    %234 = vector.broadcast %233 : vector<1x128xf32> to vector<8x128xf32>
    %235 = arith.addf %231, %234 : vector<8x128xf32>
    %cst_151 = arith.constant 1.702000e+00 : f32
    %236 = vector.broadcast %cst_151 : f32 to vector<8x128xf32>
    %237 = arith.mulf %236, %235 : vector<8x128xf32>
    %238 = arith.negf %237 : vector<8x128xf32>
    %239 = math.exp %238 : vector<8x128xf32>
    %cst_152 = arith.constant 1.000000e+00 : f32
    %240 = vector.broadcast %cst_152 : f32 to vector<8x128xf32>
    %241 = arith.addf %240, %239 : vector<8x128xf32>
    %242 = arith.divf %240, %241 : vector<8x128xf32>
    %243 = arith.mulf %235, %242 : vector<8x128xf32>
    %c1_153 = arith.constant 1 : index
    %c0_154 = arith.constant 0 : index
    %c0_155 = arith.constant 0 : index
    %244 = vector.load %arg18[%c1_153, %c0_154, %c0_155] : memref<2x128x32xf32, #tpu.memory_space<vmem>>, vector<1x128x32xf32>
    %245 = vector.shape_cast %244 : vector<1x128x32xf32> to vector<128x32xf32>
    %cst_156 = arith.constant dense<0.000000e+00> : vector<8x32xf32>
    %246 = tpu.matmul %243, %245, %cst_156 {dimension_numbers = #tpu.dot_dimension_numbers<[1], [0], [0], [1], [0, 0, 1, 1], [], []>} : vector<8x128xf32>, vector<128x32xf32>, vector<8x32xf32> -> vector<8x32xf32>
    %247 = arith.addf %202, %246 : vector<8x32xf32>
    %c1_157 = arith.constant 1 : index
    %c0_158 = arith.constant 0 : index
    %c0_159 = arith.constant 0 : index
    %248 = vector.load %arg19[%c1_157, %c0_158, %c0_159] : memref<2x1x32xf32, #tpu.memory_space<vmem>>, vector<1x1x32xf32>
    %249 = vector.shape_cast %248 : vector<1x1x32xf32> to vector<1x32xf32>
    %250 = vector.broadcast %249 : vector<1x32xf32> to vector<8x32xf32>
    %251 = arith.addf %247, %250 : vector<8x32xf32>
    %c0_160 = arith.constant 0 : index
    %c0_161 = arith.constant 0 : index
    %252 = vector.load %arg24[%c0_160, %c0_161] : memref<8x32xf32, #tpu.memory_space<vmem>>, vector<8x32xf32>
    tpu.vector_store %arg24[%c0_160, %c0_161], %251 {strides = array<i32>} : memref<8x32xf32, #tpu.memory_space<vmem>>, vector<8x32xf32>,
    %253 = arith.index_cast %arg0 : i32 to index
    %254 = memref.load %arg1[%253] : memref<2xi32, #tpu.memory_space<smem>>
    %255 = arith.index_cast %254 : i32 to index
    %c0_162 = arith.constant 0 : index
    %256 = vector.load %arg24[%255, %c0_162] : memref<8x32xf32, #tpu.memory_space<vmem>>, vector<1x32xf32>
    %c0_163 = arith.constant 0 : index
    %c0_164 = arith.constant 0 : index
    %257 = vector.load %arg20[%c0_163, %c0_164] : memref<1x32xf32, #tpu.memory_space<vmem>>, vector<1x32xf32>
    %c0_165 = arith.constant 0 : index
    %c0_166 = arith.constant 0 : index
    %258 = vector.load %arg21[%c0_165, %c0_166] : memref<1x32xf32, #tpu.memory_space<vmem>>, vector<1x32xf32>
    %cst_167 = arith.constant dense<0.000000e+00> : vector<1xf32>
    %259 = vector.multi_reduction <add>, %256, %cst_167 [1] : vector<1x32xf32> to vector<1xf32>
    %260 = vector.shape_cast %259 : vector<1xf32> to vector<1x1xf32>
    %cst_168 = arith.constant 3.200000e+01 : f32
    %261 = vector.broadcast %cst_168 : f32 to vector<1x1xf32>
    %262 = arith.divf %260, %261 : vector<1x1xf32>
    %263 = vector.broadcast %262 : vector<1x1xf32> to vector<1x32xf32>
    %264 = arith.subf %256, %263 : vector<1x32xf32>
    %265 = arith.mulf %264, %264 : vector<1x32xf32>
    %cst_169 = arith.constant dense<0.000000e+00> : vector<1xf32>
    %266 = vector.multi_reduction <add>, %265, %cst_169 [1] : vector<1x32xf32> to vector<1xf32>
    %267 = vector.shape_cast %266 : vector<1xf32> to vector<1x1xf32>
    %cst_170 = arith.constant 3.200000e+01 : f32
    %268 = vector.broadcast %cst_170 : f32 to vector<1x1xf32>
    %269 = arith.divf %267, %268 : vector<1x1xf32>
    %270 = vector.broadcast %262 : vector<1x1xf32> to vector<1x32xf32>
    %271 = arith.subf %256, %270 : vector<1x32xf32>
    %cst_171 = arith.constant 9.99999974E-6 : f32
    %272 = vector.broadcast %cst_171 : f32 to vector<1x1xf32>
    %273 = arith.addf %269, %272 : vector<1x1xf32>
    %274 = math.rsqrt %273 : vector<1x1xf32>
    %275 = vector.broadcast %274 : vector<1x1xf32> to vector<1x32xf32>
    %276 = arith.mulf %271, %275 : vector<1x32xf32>
    %277 = arith.mulf %276, %257 : vector<1x32xf32>
    %278 = arith.addf %277, %258 : vector<1x32xf32>
    %c0_172 = arith.constant 0 : index
    %c0_173 = arith.constant 0 : index
    %279 = vector.load %arg22[%c0_172, %c0_173] : memref<32x16xf32, #tpu.memory_space<vmem>>, vector<32x16xf32>
    %cst_174 = arith.constant dense<0.000000e+00> : vector<1x16xf32>
    %280 = tpu.matmul %278, %279, %cst_174 {dimension_numbers = #tpu.dot_dimension_numbers<[1], [0], [0], [1], [0, 0, 1, 1], [], []>} : vector<1x32xf32>, vector<32x16xf32>, vector<1x16xf32> -> vector<1x16xf32>
    %281 = vector.shape_cast %280 : vector<1x16xf32> to vector<1x1x16xf32>
    %c0_175 = arith.constant 0 : index
    %c0_176 = arith.constant 0 : index
    %c0_177 = arith.constant 0 : index
    %282 = vector.load %arg23[%c0_175, %c0_176, %c0_177] : memref<1x1x16xf32, #tpu.memory_space<vmem>>, vector<1x1x16xf32>
    tpu.vector_store %arg23[%c0_175, %c0_176, %c0_177], %281 {strides = array<i32>} : memref<1x1x16xf32, #tpu.memory_space<vmem>>, vector<1x1x16xf32>,
    return
  }
  func.func @transform_0(%arg0: i32, %arg1: memref<2xi32, #tpu.memory_space<smem>>) -> (i32, i32, i32) {
    %c0_i32 = arith.constant 0 : i32
    %c0_i32_0 = arith.constant 0 : i32
    %c0_i32_1 = arith.constant 0 : i32
    return %arg0, %c0_i32, %c0_i32_0 : i32, i32, i32
  }
  func.func @transform_1(%arg0: i32, %arg1: memref<2xi32, #tpu.memory_space<smem>>) -> (i32, i32) {
    %c0_i32 = arith.constant 0 : i32
    %c0_i32_0 = arith.constant 0 : i32
    %c0_i32_1 = arith.constant 0 : i32
    return %c0_i32, %c0_i32_0 : i32, i32
  }
  func.func @transform_2(%arg0: i32, %arg1: memref<2xi32, #tpu.memory_space<smem>>) -> (i32, i32, i32) {
    %c0_i32 = arith.constant 0 : i32
    %c0_i32_0 = arith.constant 0 : i32
    %c0_i32_1 = arith.constant 0 : i32
    %c0_i32_2 = arith.constant 0 : i32
    return %c0_i32, %c0_i32_0, %c0_i32_1 : i32, i32, i32
  }
  func.func @transform_3(%arg0: i32, %arg1: memref<2xi32, #tpu.memory_space<smem>>) -> (i32, i32, i32) {
    %c0_i32 = arith.constant 0 : i32
    %c0_i32_0 = arith.constant 0 : i32
    %c0_i32_1 = arith.constant 0 : i32
    %c0_i32_2 = arith.constant 0 : i32
    return %c0_i32, %c0_i32_0, %c0_i32_1 : i32, i32, i32
  }
  func.func @transform_4(%arg0: i32, %arg1: memref<2xi32, #tpu.memory_space<smem>>) -> (i32, i32, i32, i32) {
    %c0_i32 = arith.constant 0 : i32
    %c0_i32_0 = arith.constant 0 : i32
    %c0_i32_1 = arith.constant 0 : i32
    %c0_i32_2 = arith.constant 0 : i32
    %c0_i32_3 = arith.constant 0 : i32
    return %c0_i32, %c0_i32_0, %c0_i32_1, %c0_i32_2 : i32, i32, i32, i32
  }
  func.func @transform_5(%arg0: i32, %arg1: memref<2xi32, #tpu.memory_space<smem>>) -> (i32, i32, i32, i32) {
    %c0_i32 = arith.constant 0 : i32
    %c0_i32_0 = arith.constant 0 : i32
    %c0_i32_1 = arith.constant 0 : i32
    %c0_i32_2 = arith.constant 0 : i32
    %c0_i32_3 = arith.constant 0 : i32
    return %c0_i32, %c0_i32_0, %c0_i32_1, %c0_i32_2 : i32, i32, i32, i32
  }
  func.func @transform_6(%arg0: i32, %arg1: memref<2xi32, #tpu.memory_space<smem>>) -> (i32, i32, i32, i32) {
    %c0_i32 = arith.constant 0 : i32
    %c0_i32_0 = arith.constant 0 : i32
    %c0_i32_1 = arith.constant 0 : i32
    %c0_i32_2 = arith.constant 0 : i32
    %c0_i32_3 = arith.constant 0 : i32
    return %c0_i32, %c0_i32_0, %c0_i32_1, %c0_i32_2 : i32, i32, i32, i32
  }
  func.func @transform_7(%arg0: i32, %arg1: memref<2xi32, #tpu.memory_space<smem>>) -> (i32, i32, i32, i32) {
    %c0_i32 = arith.constant 0 : i32
    %c0_i32_0 = arith.constant 0 : i32
    %c0_i32_1 = arith.constant 0 : i32
    %c0_i32_2 = arith.constant 0 : i32
    %c0_i32_3 = arith.constant 0 : i32
    return %c0_i32, %c0_i32_0, %c0_i32_1, %c0_i32_2 : i32, i32, i32, i32
  }
  func.func @transform_8(%arg0: i32, %arg1: memref<2xi32, #tpu.memory_space<smem>>) -> (i32, i32, i32, i32) {
    %c0_i32 = arith.constant 0 : i32
    %c0_i32_0 = arith.constant 0 : i32
    %c0_i32_1 = arith.constant 0 : i32
    %c0_i32_2 = arith.constant 0 : i32
    %c0_i32_3 = arith.constant 0 : i32
    return %c0_i32, %c0_i32_0, %c0_i32_1, %c0_i32_2 : i32, i32, i32, i32
  }
  func.func @transform_9(%arg0: i32, %arg1: memref<2xi32, #tpu.memory_space<smem>>) -> (i32, i32, i32, i32) {
    %c0_i32 = arith.constant 0 : i32
    %c0_i32_0 = arith.constant 0 : i32
    %c0_i32_1 = arith.constant 0 : i32
    %c0_i32_2 = arith.constant 0 : i32
    %c0_i32_3 = arith.constant 0 : i32
    return %c0_i32, %c0_i32_0, %c0_i32_1, %c0_i32_2 : i32, i32, i32, i32
  }
  func.func @transform_10(%arg0: i32, %arg1: memref<2xi32, #tpu.memory_space<smem>>) -> (i32, i32, i32, i32) {
    %c0_i32 = arith.constant 0 : i32
    %c0_i32_0 = arith.constant 0 : i32
    %c0_i32_1 = arith.constant 0 : i32
    %c0_i32_2 = arith.constant 0 : i32
    %c0_i32_3 = arith.constant 0 : i32
    return %c0_i32, %c0_i32_0, %c0_i32_1, %c0_i32_2 : i32, i32, i32, i32
  }
  func.func @transform_11(%arg0: i32, %arg1: memref<2xi32, #tpu.memory_space<smem>>) -> (i32, i32, i32) {
    %c0_i32 = arith.constant 0 : i32
    %c0_i32_0 = arith.constant 0 : i32
    %c0_i32_1 = arith.constant 0 : i32
    %c0_i32_2 = arith.constant 0 : i32
    return %c0_i32, %c0_i32_0, %c0_i32_1 : i32, i32, i32
  }
  func.func @transform_12(%arg0: i32, %arg1: memref<2xi32, #tpu.memory_space<smem>>) -> (i32, i32, i32) {
    %c0_i32 = arith.constant 0 : i32
    %c0_i32_0 = arith.constant 0 : i32
    %c0_i32_1 = arith.constant 0 : i32
    %c0_i32_2 = arith.constant 0 : i32
    return %c0_i32, %c0_i32_0, %c0_i32_1 : i32, i32, i32
  }
  func.func @transform_13(%arg0: i32, %arg1: memref<2xi32, #tpu.memory_space<smem>>) -> (i32, i32, i32) {
    %c0_i32 = arith.constant 0 : i32
    %c0_i32_0 = arith.constant 0 : i32
    %c0_i32_1 = arith.constant 0 : i32
    %c0_i32_2 = arith.constant 0 : i32
    return %c0_i32, %c0_i32_0, %c0_i32_1 : i32, i32, i32
  }
  func.func @transform_14(%arg0: i32, %arg1: memref<2xi32, #tpu.memory_space<smem>>) -> (i32, i32, i32) {
    %c0_i32 = arith.constant 0 : i32
    %c0_i32_0 = arith.constant 0 : i32
    %c0_i32_1 = arith.constant 0 : i32
    %c0_i32_2 = arith.constant 0 : i32
    return %c0_i32, %c0_i32_0, %c0_i32_1 : i32, i32, i32
  }
  func.func @transform_15(%arg0: i32, %arg1: memref<2xi32, #tpu.memory_space<smem>>) -> (i32, i32, i32) {
    %c0_i32 = arith.constant 0 : i32
    %c0_i32_0 = arith.constant 0 : i32
    %c0_i32_1 = arith.constant 0 : i32
    %c0_i32_2 = arith.constant 0 : i32
    return %c0_i32, %c0_i32_0, %c0_i32_1 : i32, i32, i32
  }
  func.func @transform_16(%arg0: i32, %arg1: memref<2xi32, #tpu.memory_space<smem>>) -> (i32, i32, i32) {
    %c0_i32 = arith.constant 0 : i32
    %c0_i32_0 = arith.constant 0 : i32
    %c0_i32_1 = arith.constant 0 : i32
    %c0_i32_2 = arith.constant 0 : i32
    return %c0_i32, %c0_i32_0, %c0_i32_1 : i32, i32, i32
  }
  func.func @transform_17(%arg0: i32, %arg1: memref<2xi32, #tpu.memory_space<smem>>) -> (i32, i32, i32) {
    %c0_i32 = arith.constant 0 : i32
    %c0_i32_0 = arith.constant 0 : i32
    %c0_i32_1 = arith.constant 0 : i32
    %c0_i32_2 = arith.constant 0 : i32
    return %c0_i32, %c0_i32_0, %c0_i32_1 : i32, i32, i32
  }
  func.func @transform_18(%arg0: i32, %arg1: memref<2xi32, #tpu.memory_space<smem>>) -> (i32, i32) {
    %c0_i32 = arith.constant 0 : i32
    %c0_i32_0 = arith.constant 0 : i32
    %c0_i32_1 = arith.constant 0 : i32
    return %c0_i32, %c0_i32_0 : i32, i32
  }
  func.func @transform_19(%arg0: i32, %arg1: memref<2xi32, #tpu.memory_space<smem>>) -> (i32, i32) {
    %c0_i32 = arith.constant 0 : i32
    %c0_i32_0 = arith.constant 0 : i32
    %c0_i32_1 = arith.constant 0 : i32
    return %c0_i32, %c0_i32_0 : i32, i32
  }
  func.func @transform_20(%arg0: i32, %arg1: memref<2xi32, #tpu.memory_space<smem>>) -> (i32, i32) {
    %c0_i32 = arith.constant 0 : i32
    %c0_i32_0 = arith.constant 0 : i32
    %c0_i32_1 = arith.constant 0 : i32
    return %c0_i32, %c0_i32_0 : i32, i32
  }
  func.func @transform_21(%arg0: i32, %arg1: memref<2xi32, #tpu.memory_space<smem>>) -> (i32, i32, i32) {
    %c0_i32 = arith.constant 0 : i32
    %c0_i32_0 = arith.constant 0 : i32
    %c0_i32_1 = arith.constant 0 : i32
    return %arg0, %c0_i32, %c0_i32_0 : i32, i32, i32
  }
}

</mosaic_0001>

<bundles_post_ra>
// kernel: _lambda_.1
= control target key start
LH: loop header
LB: loop body
LE: loop exit
PB: predicated region body
PF: predicated region fallthrough
CT: control target
= control target key end

     0   :  { %s7391_s0 = inlined_call_operand.vmem [shape: s32[2], index: 0, kind: input, shape index: {}]   ;;  %s7392_s1 = inlined_call_operand.vmem [shape: f32[2,8,32], index: 1, kind: input, shape index: {}]   ;;  %s7393_s2 = inlined_call_operand.vmem [shape: f32[8,32], index: 2, kind: input, shape index: {}]   ;;  %s7394_s3 = inlined_call_operand.vmem [shape: f32[2,1,32], index: 3, kind: input, shape index: {}]   ;;  %s7395_s4 = inlined_call_operand.vmem [shape: f32[2,1,32], index: 4, kind: input, shape index: {}]   ;;  %s7396_s5 = inlined_call_operand.hbm [shape: f32[2,4,32,8], index: 5, kind: input, shape index: {}]   ;;  %s7397_s6 = inlined_call_operand.vmem [shape: f32[2,4,1,8], index: 6, kind: input, shape index: {}]   ;;  %s7398_s7 = inlined_call_operand.hbm [shape: f32[2,4,32,8], index: 7, kind: input, shape index: {}]   ;;  %s7399_s8 = inlined_call_operand.vmem [shape: f32[2,4,1,8], index: 8, kind: input, shape index: {}]   ;;  %s7400_s9 = inlined_call_operand.hbm [shape: f32[2,4,32,8], index: 9, kind: input, shape index: {}]   ;;  %s7401_s10 = inlined_call_operand.vmem [shape: f32[2,4,1,8], index: 10, kind: input, shape index: {}]   ;;  %s7402_s11 = inlined_call_operand.vmem [shape: f32[2,4,8,32], index: 11, kind: input, shape index: {}]   ;;  %s7403_s12 = inlined_call_operand.vmem [shape: f32[2,1,32], index: 12, kind: input, shape index: {}]   ;;  %s7404_s13 = inlined_call_operand.vmem [shape: f32[2,1,32], index: 13, kind: input, shape index: {}]   ;;  %s7405_s14 = inlined_call_operand.vmem [shape: f32[2,1,32], index: 14, kind: input, shape index: {}]   ;;  %s7406_s15 = inlined_call_operand.vmem [shape: f32[2,32,128], index: 15, kind: input, shape index: {}]   ;;  %s7407_s16 = inlined_call_operand.vmem [shape: f32[2,1,128], index: 16, kind: input, shape index: {}]   ;;  %s7408_s17 = inlined_call_operand.hbm [shape: f32[2,128,32], index: 17, kind: input, shape index: {}]   ;;  %s7409_s18 = inlined_call_operand.vmem [shape: f32[2,1,32], index: 18, kind: input, shape index: {}]   ;;  %s7410_s19 = inlined_call_operand.vmem [shape: f32[1,32], index: 19, kind: input, shape index: {}]   ;;  %s7411_s20 = inlined_call_operand.vmem [shape: f32[1,32], index: 20, kind: input, shape index: {}]   ;;  %s7412_s21 = inlined_call_operand.vmem [shape: f32[32,16], index: 21, kind: input, shape index: {}]   ;;  %s7413_s22 = inlined_call_operand.hbm [shape: f32[2,1,16], index: 22, kind: output, shape index: {}]  }
   0x1   :  { %7425 = sst [smem:[#allocation24_spill]] %s7391_s0 }
   0x2   :  { %7426 = sst [smem:[#allocation25_spill]] %s7392_s1 }
   0x3   :  { %7427 = sst [smem:[#allocation26_spill]] %s7393_s2 }
   0x4   :  { %7428 = sst [smem:[#allocation27_spill]] %s7394_s3 }
   0x5   :  { %7429 = sst [smem:[#allocation28_spill]] %s7395_s4 }
   0x6   :  { %7430 = sst [smem:[#allocation29_spill]] %s7396_s5 }
   0x7   :  { %7431 = sst [smem:[#allocation30_spill]] %s7397_s6 }
   0x8   :  { %7432 = sst [smem:[#allocation31_spill]] %s7398_s7 }
   0x9   :  { %7433 = sst [smem:[#allocation32_spill]] %s7407_s16 }
   0xa   :  { %s7434_s29 = sld [smem:[#allocation24_spill]] }
  0x10   :  { %s27_s16 = sshll.u32 %s7434_s29, 4  ;;  %s28_s16 = int_to_ptr.vmem [resolvable:$true] %s27_s16 }
  0x11   :  { %s6282_s30 = scalar_lea.vmem %s28_s16, 16  ;;  %p6287_p1 = scmp.lt.s32.totalorder %s28_s16, %s28_s16 }
  0x12   :  { %p6283_p0 = scmp.ne.s32.totalorder %s28_s16, %s6282_s30  ;;  %p6288_p2 = scmp.lt.s32.totalorder %s6282_s30, %s6282_s30 }
  0x14   :  { %p6289_p3 = por %p6288_p2, %p6287_p1 }
  0x16   :  { %p6290_p4 = pnand %p6289_p3, %p6283_p0 }
  0x18   :  { %6293 = shalt.err (!%p6290_p4)  }
  0x19   :  { %s6474_s4 = smov [#allocation4]  }
  0x1a   :  { %30 = dma.vmem_to_smem %s28_s16, 16, %s6474_s4, [#allocation3] }
  0x1b   :  { %6440 = dma.done.wait [#allocation3], 16 }
  0x1c   :  { %6441 = vsyncadd [#allocation3], 4294967280 }
  0x1d   :  { %32 = sfence }
  0x1e   :  { %33 = vsyncpa [#allocation6], 0 }
  0x1f   :  { %34 = vsyncpa [#allocation9], 0 }
  0x20   :  { %35 = vsyncpa [#allocation12], 0 }
  0x21   :  { %36 = vsyncpa [#allocation7], 0 }
  0x22   :  { %38 = vsyncpa [#allocation7 + $0x1], 0  ;;  %s6603_s0 = smov 0   ;;  %s6605_s23 = smov 0  }
  0x23   :  { %s6607_s1 = smov 0   ;;  %s6609_s5 = smov 0  }
  0x24 LB: > { %7435 = sst [smem:[#allocation19_spill]] %s6460_s0  ;;  %s6624_s16 = sadd.s32 4294967295, %s6472_s5   ;;  %s6472_s5 = sphi %s6609_s5, %s7454_s5   ;;  %s6468_s1 = sphi %s6607_s1, %s7456_s1   ;;  %s6464_s23 = sphi %s6605_s23, %s7458_s23   ;;  %s6460_s0 = sphi %s6603_s0, %s7457_s0  }
  0x25   : > { %7436 = sst [smem:[#allocation20_spill]] %s6468_s1  ;;  %s5300_s24 = sadd.s32 4294967294, %s6472_s5  }
  0x26   : > { %s6628_s6 = sadd.s32 1, %s6472_s5   ;;  %s497_s25 = sadd.s32 1, %s6468_s1 }
  0x27   : > { %7437 = sst [smem:[#allocation21_spill]] %s6628_s6  ;;  %s494_s26 = ssub.s32 %s6472_s5, %s6628_s6 }
  0x28   : > { %p507_p5 = scmp.ne.s32.totalorder %s6468_s1, %s6464_s23  ;;  %p495_p6 = scmp.eq.s32.totalorder %s494_s26, 0 }
  0x29   : > { %p508_p7 = scmp.eq.s32.totalorder %s6624_s16, 1  ;;  %p513_p8 = scmp.ne.s32.totalorder %s6464_s23, %s6460_s0 }
  0x2a   : > { %p514_p9 = scmp.eq.s32.totalorder %s5300_s24, 1  ;;  %p5301_p12 = scmp.ge.s32.totalorder %s6472_s5, 1 }
  0x2b   : > { %s6639_s2 = scalar_select %p495_p6, %s6468_s1, %s497_s25  }
  0x2c   : > { %p6641_p10 = por %p508_p7, %p507_p5  ;;  %p6645_p11 = por %p514_p9, %p513_p8 }
  0x2d   : > { %7438 = sst [smem:[#allocation22_spill]] %s6639_s2  ;;  %p521_p13 = scmp.lt.s32.totalorder %s6472_s5, 3 }
  0x2e   : > { %s7440_s3 = scalar_select %p6645_p11, 1, 0 }
  0x2f   : > { %p6181_p0 = scmp.eq.s32.totalorder %s6624_s16, 0  ;;  %p6652_p1 = pnand %p5301_p12, %p521_p13 }
  0x30   : > { %7441 = sst [smem:[#allocation23_spill]] %s7440_s3  ;;  %s6475_s29 = smov [#allocation8]  }
  0x31   : > { %p6164_p2 = pneg %p6652_p1  ;;  %s558_s30 = sshll.u32 %s6475_s29, 4  ;;  %s559_s30 = int_to_ptr.vmem [resolvable:$true] %s558_s30 }
  0x32   : > { %s6476_s24 = smov [#allocation5]   ;;  %s6477_s26 = smov [#allocation10]  }
  0x33   : > { %p6660_p3 = pnand %p6181_p0, %p6164_p2  ;;  %s542_s25 = sshll.u32 %s6476_s24, 4  ;;  %s543_s25 = int_to_ptr.vmem [resolvable:$true] %s542_s25 }
  0x34   : > { %s574_s2 = sshll.u32 %s6477_s26, 4  ;;  %s6305_s1 = scalar_lea.vmem %s559_s30, 4096  ;;  %s575_s2 = int_to_ptr.vmem [resolvable:$true] %s574_s2 }
  0x35   : > { %p6296_p4 = pneg %p6660_p3  ;;  %p6306_p5 = scmp.ne.s32.totalorder %s559_s30, %s6305_s1 }
  0x36   : > { %p6313_p8 = scmp.lt.s32.totalorder %s559_s30, %s559_s30  ;;  %p6314_p9 = scmp.lt.s32.totalorder %s6305_s1, %s6305_s1 }
  0x37   : > { %p6308_p6 = pnand %p6306_p5, %p6296_p4 }
  0x38   : > { %p6315_p12 = por %p6314_p9, %p6313_p8 }
  0x39   : > { %p6309_p7 = pneg %p6308_p6 }
  0x3b   : > { %p6316_p13 = pnand %p6315_p12, %p6309_p7 }
  0x3d   : > { %6319 = shalt.err (!%p6316_p13)
}
  0x3e   : > { %s6478_s29 = smov 128   ;;  %s6479_s24 = smov 8  }
  0x3f   : > { %s7444_s7 = sld [smem:[#allocation31_spill]]  ;;  %s6331_s3 = scalar_lea.vmem %s543_s25, 4096 }
  0x40   : > { %p6332_p2 = scmp.ne.s32.totalorder %s543_s25, %s6331_s3  ;;  %p6339_p7 = scmp.lt.s32.totalorder %s543_s25, %s543_s25 }
  0x41   : > { %p6340_p8 = scmp.lt.s32.totalorder %s6331_s3, %s6331_s3 }
  0x42   : > { %p6334_p5 = pnand %p6332_p2, %p6296_p4 }
  0x43   : > { %p6341_p9 = por %p6340_p8, %p6339_p7 }
  0x44   : > { %p6335_p6 = pneg %p6334_p5 }
  0x45   : > { %6170 = dma.hbm_to_vmem [thread:$0]  (!%p6660_p3), %s7444_s7, 4096, %s559_s30, [#allocation9], %s6478_s29, %s6478_s29, %s6479_s24  }
  0x46   : > { %p6342_p12 = pnand %p6341_p9, %p6335_p6 }
  0x48   : > { %6345 = shalt.err (!%p6342_p12)
}
  0x49   : > { %s7445_s6 = sld [smem:[#allocation29_spill]]  ;;  %s6357_s30 = scalar_lea.vmem %s575_s2, 4096 }
  0x4a   : > { %p6358_p13 = scmp.ne.s32.totalorder %s575_s2, %s6357_s30  ;;  %p6365_p7 = scmp.lt.s32.totalorder %s575_s2, %s575_s2 }
  0x4b   : > { %p6366_p6 = scmp.lt.s32.totalorder %s6357_s30, %s6357_s30 }
  0x4c   : > { %p6360_p2 = pnand %p6358_p13, %p6296_p4 }
  0x4d   : > { %p6367_p8 = por %p6366_p6, %p6365_p7 }
  0x4e   : > { %p6361_p5 = pneg %p6360_p2 }
  0x4f   : > { %6167 = dma.hbm_to_vmem [thread:$0]  (!%p6660_p3), %s7445_s6, 4096, %s543_s25, [#allocation6], %s6478_s29, %s6478_s29, %s6479_s24  }
  0x50   : > { %p6368_p9 = pnand %p6367_p8, %p6361_p5 }
  0x52   : > { %6371 = shalt.err (!%p6368_p9)
}
  0x53   : > { %6173 = dma.hbm_to_vmem [thread:$0]  (!%p6660_p3), %s7400_s9, 4096, %s575_s2, [#allocation9], %s6478_s29, %s6478_s29, %s6479_s24  }
  0x54   : > { %s6480_s25 = smov [#allocation11]  }
  0x55   : > { %s608_s26 = sshll.u32 %s6480_s25, 4  ;;  %s609_s26 = int_to_ptr.vmem [resolvable:$true] %s608_s26 }
  0x56   : > { %s6383_s1 = scalar_lea.vmem %s609_s26, 4096  ;;  %p6391_p5 = scmp.lt.s32.totalorder %s609_s26, %s609_s26 }
  0x57   : > { %p6384_p12 = scmp.ne.s32.totalorder %s609_s26, %s6383_s1  ;;  %p6392_p7 = scmp.lt.s32.totalorder %s6383_s1, %s6383_s1 }
  0x59   : > { %p6386_p13 = pnand %p6384_p12, %p6296_p4  ;;  %p6393_p6 = por %p6392_p7, %p6391_p5 }
  0x5b   : > { %p6387_p2 = pneg %p6386_p13 }
  0x5d   : > { %p6394_p8 = pnand %p6393_p6, %p6387_p2 }
  0x5f   : > { %6397 = shalt.err (!%p6394_p8)
}
  0x60   : > { %6176 = dma.hbm_to_vmem [thread:$0]  (!%p6660_p3), %s7408_s17, 4096, %s609_s26, [#allocation12], %s6478_s29, %s6478_s29, %s6479_s24  }
  0x61   : > { %643 = sbr.rel (%p6652_p1) target bundleno = 5011 (0x1393), region = 104 }
  0x66   : > { %6443 = dma.done.wait (%p6181_p0), [#allocation6], 4096  }
  0x67   : > { %6445 = vsyncadd (%p6181_p0), [#allocation6], 4294963200 }
  0x68   : > { %6447 = dma.done.wait (%p6181_p0), [#allocation9], 8192  }
  0x69   : > { %6449 = vsyncadd (%p6181_p0), [#allocation9], 4294959104 }
  0x6a   : > { %6451 = dma.done.wait (%p6181_p0), [#allocation12], 4096  }
  0x6b   : > { %6453 = vsyncadd (%p6181_p0), [#allocation12], 4294963200  ;;  %p713_p1 = scmp.lt.s32.totalorder %s6624_s16, 1  ;;  %s7446_s30 = sld [smem:[#allocation25_spill]]  ;;  %vm728_vm0 = vcmask 261120   ;;  %v6481_v9 = vmov 0.0  }
  0x6c   : > { %s7447_s26 = sld [smem:[#allocation26_spill]]  ;;  %5659 = vmatprep.subr.mxu0 %v6481_v9  ;;  %5692 = vmatprep.subr.mxu1 %v6481_v9  ;;  %v760_v10 = vld [vmem:[#allocation5 + $0x18] sm:$0xff]  ;;  %v759_v12 = vld [vmem:[#allocation5 + $0x10] sm:$0xff]  ;;  %v758_v14 = vld [vmem:[#allocation5 + $0x8] sm:$0xff]  ;;  %vm6482_vm1 = vmmov 0   ;;  %vm1732_vm2 = vcmask 64512  }
  0x6d   : > { %s714_s28 = scalar_select %p713_p1, %s6624_s16, 1  ;;  %v772_v11 = vld [vmem:[#allocation5 + $0x78] sm:$0xff]  ;;  %5660 = vmatpush3.msra.mxu0 %v760_v10  ;;  %v771_v13 = vld [vmem:[#allocation5 + $0x70] sm:$0xff]  ;;  %v770_v15 = vld [vmem:[#allocation5 + $0x68] sm:$0xff]  ;;  %5667 = vmatprep.mubr.msk.f32.mxu0 %vm6482_vm1, %v6481_v9  ;;  %vm5095_vm4 = vcmask 253952   ;;  %vm5188_vm5 = vcmask 122880  }
  0x6e   : > { %5693 = vmatpush3.msra.mxu1 %v772_v11  ;;  %5661 = vmatprep.subr.mxu0 %v6481_v9  ;;  %v757_v16 = vld [vmem:[#allocation5] sm:$0xff]  ;;  %s7448_s6 = sld [smem:[#allocation27_spill]]  ;;  %v764_v27 = vld [vmem:[#allocation5 + $0x38] sm:$0xff]  ;;  %v763_v29 = vld [vmem:[#allocation5 + $0x30] sm:$0xff] }
  0x6f   : > { %s5312_s4 = sshll.u32 %s714_s28, 3  ;;  %5694 = vmatprep.subr.mxu1 %v6481_v9  ;;  %5662 = vmatpush3.msra.mxu0 %v759_v12  ;;  %v769_v17 = vld [vmem:[#allocation5 + $0x60] sm:$0xff]  ;;  %s7449_s29 = sld [smem:[#allocation28_spill]]  ;;  %v1091_v28 = vld [vmem:[#allocation8 + $0x38] sm:$0xff]  ;;  %v1090_v30 = vld [vmem:[#allocation8 + $0x30] sm:$0xff] }
  0x70   : > { %5695 = vmatpush3.msra.mxu1 %v771_v13  ;;  %5663 = vmatprep.subr.mxu0 %v6481_v9  ;;  %v762_v31 = vld [vmem:[#allocation5 + $0x28] sm:$0xff]  ;;  %v761_v33 = vld [vmem:[#allocation5 + $0x20] sm:$0xff]  ;;  %v768_v35 = vld [vmem:[#allocation5 + $0x58] sm:$0xff]  ;;  %s7450_s25 = sld [smem:[#allocation30_spill]] }
  0x71   : > { %s716_s0 = scalar_lea.vmem %s7446_s30, %s5312_s4  ;;  %5696 = vmatprep.subr.mxu1 %v6481_v9  ;;  %5664 = vmatpush3.msra.mxu0 %v758_v14  ;;  %v1089_v32 = vld [vmem:[#allocation8 + $0x28] sm:$0xff]  ;;  %v1088_v34 = vld [vmem:[#allocation8 + $0x20] sm:$0xff]  ;;  %v1099_v36 = vld [vmem:[#allocation8 + $0x78] sm:$0xff]  ;;  %s7451_s3 = sld [smem:[#allocation32_spill]] }
  0x72   : > { %v717_v0 = vld [vmem:[%s716_s0] sm:$0xff]  ;;  %5697 = vmatpush3.msra.mxu1 %v770_v15  ;;  %5665 = vmatprep.subr.mxu0 %v6481_v9  ;;  %v767_v37 = vld [vmem:[#allocation5 + $0x50] sm:$0xff]  ;;  %v766_v39 = vld [vmem:[#allocation5 + $0x48] sm:$0xff]  ;;  %s711_s30 = sand.u32 1, %s6464_s23   ;;  %s5439_s0 = sshll.u32 %s6624_s16, 4 }
  0x73   : > { %v718_v1 = vld [vmem:[%s7447_s26] sm:$0xff]  ;;  %5698 = vmatprep.subr.mxu1 %v6481_v9  ;;  %5666 = vmatpush3.msra.mxu0 %v757_v16  ;;  %v1098_v38 = vld [vmem:[#allocation8 + $0x70] sm:$0xff]  ;;  %v1097_v40 = vld [vmem:[#allocation8 + $0x68] sm:$0xff]  ;;  %s5090_s26 = sld [smem:[#allocation4 + %s6624_s16]]  ;;  %s7350_s2 = scalar_lea.hbm %s7413_s22, %s5439_s0 }
  0x74   : > { %v6732_v2 = vadd.f32 %v718_v1, %v717_v0  ;;  %5699 = vmatpush3.msra.mxu1 %v769_v17  ;;  %5670 = vmatprep.subr.mxu0 %v6481_v9  ;;  %v5313_v22 = vld [vmem:[%s7448_s6] ss:$0 sm:$0xff]  ;;  %v765_v41 = vld [vmem:[#allocation5 + $0x40] sm:$0xff]  ;;  %v1086_v45 = vld [vmem:[#allocation8 + $0x10] sm:$0xff]  ;;  %s5191_s28 = scalar_lea.sflag [#allocation7], %s711_s30  ;;  %s6484_s16 = smov [#allocation13]  }
  0x75   : > { %5700 = vmatprep.mubr.msk.f32.mxu1 %vm6482_vm1, %v6481_v9  ;;  %5714 = vmatprep.subr.mxu1 %v6481_v9  ;;  %v5314_v24 = vld [vmem:[%s7449_s29] ss:$0 sm:$0xff]  ;;  %v1096_v42 = vld [vmem:[#allocation8 + $0x60] sm:$0xff]  ;;  %v1414_v46 = vld [vmem:[#allocation10 + $0x30] sm:$0xff]  ;;  %s6402_s24 = sshll.u32 %s6484_s16, 4  ;;  %s6403_s24 = int_to_ptr.vmem [resolvable:$false] %s6402_s24 }
  0x76   : > { %v729_v3 = vsel %vm728_vm0, %v6732_v2, 0.0  ;;  %v1087_v43 = vld [vmem:[#allocation8 + $0x18] sm:$0xff]  ;;  %v1085_v47 = vld [vmem:[#allocation8 + $0x8] sm:$0xff]  ;;  %v1084_v49 = vld [vmem:[#allocation8] sm:$0xff] }
  0x77   : > { %730 = vadd.xlane.f32.xlu0 %v729_v3  ;;  %v1415_v44 = vld [vmem:[#allocation10 + $0x38] sm:$0xff]  ;;  %v1413_v48 = vld [vmem:[#allocation10 + $0x28] sm:$0xff]  ;;  %v1412_v50 = vld [vmem:[#allocation10 + $0x20] sm:$0xff] }
  0x78   : > { %v1095_v51 = vld [vmem:[#allocation8 + $0x58] sm:$0xff]  ;;  %v1094_v53 = vld [vmem:[#allocation8 + $0x50] sm:$0xff]  ;;  %v1093_v55 = vld [vmem:[#allocation8 + $0x48] sm:$0xff] }
  0x79   : > { %v1423_v52 = vld [vmem:[#allocation10 + $0x78] sm:$0xff]  ;;  %v1422_v54 = vld [vmem:[#allocation10 + $0x70] sm:$0xff]  ;;  %v1421_v56 = vld [vmem:[#allocation10 + $0x68] sm:$0xff]  ;;  %s5091_s1 = scalar_lea.vmem [#allocation2], %s5090_s26  ;;  %s712_s26 = scalar_lea.vmem [#allocation13], %s711_s30 }
  0x7a   : > { %v1092_v57 = vld [vmem:[#allocation8 + $0x40] sm:$0xff]  ;;  %v1411_v59 = vld [vmem:[#allocation10 + $0x18] sm:$0xff]  ;;  %v1410_v60 = vld [vmem:[#allocation10 + $0x10] sm:$0xff] }
  0x7b   : > { %v1420_v58 = vld [vmem:[#allocation10 + $0x60] sm:$0xff]  ;;  %v1409_v61 = vld [vmem:[#allocation10 + $0x8] sm:$0xff]  ;;  %v1419_v63 = vld [vmem:[#allocation10 + $0x58] sm:$0xff] }
  0x7c   : > { %v1408_v62 = vld [vmem:[#allocation10] sm:$0xff]  ;;  %v1418_v0 = vld [vmem:[#allocation10 + $0x50] sm:$0xff]  ;;  %v1417_v1 = vld [vmem:[#allocation10 + $0x48] sm:$0xff] }
  0x7d   : > { %v1416_v3 = vld [vmem:[#allocation10 + $0x40] sm:$0xff]  ;;  %v5316_v12 = vld [vmem:[%s7450_s25 + $0x1] ss:$0 sm:$0xff]  ;;  %v5326_v17 = vld [vmem:[%s7399_s8 + $0x3] ss:$0 sm:$0xff] }
 0x100   : > { %v731_v4 = vpop.xlane.xlu0 %730 }
 0x101   : > { %v733_v5 = vmul.f32 0.03125, %v731_v4 }
 0x103   : > { %v734_v6 = vsub.f32 %v6732_v2, %v733_v5 }
 0x105   : > { %v735_v7 = vmul.f32 %v734_v6, %v734_v6 }
 0x107   : > { %v736_v8 = vsel %vm728_vm0, %v735_v7, 0.0 }
 0x108   : > { %737 = vadd.xlane.f32.xlu0 %v736_v8  ;;  %v5324_v8 = vld [vmem:[%s7399_s8 + $0x1] ss:$0 sm:$0xff] }
 0x191   : > { %v738_v18 = vpop.xlane.xlu0 %737 }
 0x192   : > { %v739_v19 = vmul.f32 0.03125, %v738_v18 }
 0x194   : > { %v740_v20 = vadd.f32 1e-05, %v739_v19 }
 0x196   : > { %6232 = vrsqrt.f32 %v740_v20  ;;  %v5318_v20 = vld [vmem:[%s7450_s25 + $0x3] ss:$0 sm:$0xff] }
 0x1a3   : > { %v6233_v21 = vpop.eup %6232 }
 0x1a4   : > { %v742_v23 = vmul.f32 %v6233_v21, %v734_v6 }
 0x1a6   : > { %v749_v25 = vmul.f32 %v5313_v22, %v742_v23 }
 0x1a8   : > { %v6758_v26 = vadd.f32 %v5314_v24, %v749_v25  ;;  %v5323_v25 = vld [vmem:[%s7399_s8] ss:$0 sm:$0xff] }
 0x1aa   : > { %5668 = vmatmul.mubr.msk.f32.vlgmr.msra.gmra.mxu0 %vm728_vm0, %v6758_v26  ;;  %5701 = vmatmul.mubr.msk.f32.vlgmr.msra.gmra.mxu1 %vm728_vm0, %v6758_v26 }
 0x1ab   : > { %5671 = vmatpush3.msra.mxu0 %v764_v27  ;;  %5715 = vmatpush3.msra.mxu1 %v1091_v28  ;;  %v5315_v28 = vld [vmem:[%s7450_s25] ss:$0 sm:$0xff] }
 0x1ac   : > { %5672 = vmatprep.subr.mxu0 %v6481_v9  ;;  %5716 = vmatprep.subr.mxu1 %v6481_v9 }
 0x1ad   : > { %5673 = vmatpush3.msra.mxu0 %v763_v29  ;;  %5717 = vmatpush3.msra.mxu1 %v1090_v30 }
 0x1ae   : > { %5674 = vmatprep.subr.mxu0 %v6481_v9  ;;  %5718 = vmatprep.subr.mxu1 %v6481_v9 }
 0x1af   : > { %5675 = vmatpush3.msra.mxu0 %v762_v31  ;;  %5719 = vmatpush3.msra.mxu1 %v1089_v32 }
 0x1b0   : > { %5676 = vmatprep.subr.mxu0 %v6481_v9  ;;  %5720 = vmatprep.subr.mxu1 %v6481_v9 }
 0x1b1   : > { %5677 = vmatpush3.msra.mxu0 %v761_v33  ;;  %5678 = vmatprep.mubr.msk.f32.mxu0 %vm6482_vm1, %v6481_v9 }
 0x1b2   : > { %5721 = vmatpush3.msra.mxu1 %v1088_v34  ;;  %5722 = vmatprep.mubr.msk.f32.mxu1 %vm6482_vm1, %v6481_v9 }
 0x1b3   : > { %5679 = vmatmul.mubr.msk.f32.vlgmr.msra.gmra.mxu0 %vm728_vm0, %v6758_v26  ;;  %5681 = vmatprep.subr.mxu0 %v6481_v9 }
 0x1b4   : > { %5723 = vmatmul.mubr.msk.f32.vlgmr.msra.gmra.mxu1 %vm728_vm0, %v6758_v26  ;;  %5736 = vmatprep.subr.mxu1 %v6481_v9 }
 0x1b5   : > { %5682 = vmatpush3.msra.mxu0 %v768_v35  ;;  %5737 = vmatpush3.msra.mxu1 %v1099_v36  ;;  %v5325_v35 = vld [vmem:[%s7399_s8 + $0x2] ss:$0 sm:$0xff] }
 0x1b6   : > { %5683 = vmatprep.subr.mxu0 %v6481_v9  ;;  %5738 = vmatprep.subr.mxu1 %v6481_v9 }
 0x1b7   : > { %5684 = vmatpush3.msra.mxu0 %v767_v37  ;;  %5739 = vmatpush3.msra.mxu1 %v1098_v38  ;;  %v5317_v37 = vld [vmem:[%s7450_s25 + $0x2] ss:$0 sm:$0xff] }
 0x1b8   : > { %5685 = vmatprep.subr.mxu0 %v6481_v9  ;;  %5740 = vmatprep.subr.mxu1 %v6481_v9 }
 0x1b9   : > { %5686 = vmatpush3.msra.mxu0 %v766_v39  ;;  %5741 = vmatpush3.msra.mxu1 %v1097_v40 }
 0x1ba   : > { %5687 = vmatprep.subr.mxu0 %v6481_v9  ;;  %5742 = vmatprep.subr.mxu1 %v6481_v9 }
 0x1bb   : > { %5688 = vmatpush3.msra.mxu0 %v765_v41  ;;  %5689 = vmatprep.mubr.msk.f32.mxu0 %vm6482_vm1, %v6481_v9 }
 0x1bc   : > { %5743 = vmatpush3.msra.mxu1 %v1096_v42  ;;  %5744 = vmatprep.mubr.msk.f32.mxu1 %vm6482_vm1, %v6481_v9 }
 0x1bd   : > { %5690 = vmatmul.mubr.msk.f32.vlgmr.msra.gmra.mxu0 %vm728_vm0, %v6758_v26  ;;  %5703 = vmatprep.subr.mxu0 %v6481_v9 }
 0x1be   : > { %5745 = vmatmul.mubr.msk.f32.vlgmr.msra.gmra.mxu1 %vm728_vm0, %v6758_v26  ;;  %5758 = vmatprep.subr.mxu1 %v6481_v9 }
 0x1bf   : > { %5704 = vmatpush3.msra.mxu0 %v1087_v43  ;;  %5759 = vmatpush3.msra.mxu1 %v1415_v44  ;;  %v5331_v43 = vld [vmem:[%s7401_s10] ss:$0 sm:$0xff] }
 0x1c0   : > { %5705 = vmatprep.subr.mxu0 %v6481_v9  ;;  %5760 = vmatprep.subr.mxu1 %v6481_v9 }
 0x1c1   : > { %5706 = vmatpush3.msra.mxu0 %v1086_v45  ;;  %5761 = vmatpush3.msra.mxu1 %v1414_v46 }
 0x1c2   : > { %5707 = vmatprep.subr.mxu0 %v6481_v9  ;;  %5762 = vmatprep.subr.mxu1 %v6481_v9 }
 0x1c3   : > { %5708 = vmatpush3.msra.mxu0 %v1085_v47  ;;  %5763 = vmatpush3.msra.mxu1 %v1413_v48 }
 0x1c4   : > { %5709 = vmatprep.subr.mxu0 %v6481_v9  ;;  %5764 = vmatprep.subr.mxu1 %v6481_v9 }
 0x1c5   : > { %5710 = vmatpush3.msra.mxu0 %v1084_v49  ;;  %5711 = vmatprep.mubr.msk.f32.mxu0 %vm6482_vm1, %v6481_v9 }
 0x1c6   : > { %5765 = vmatpush3.msra.mxu1 %v1412_v50  ;;  %5766 = vmatprep.mubr.msk.f32.mxu1 %vm6482_vm1, %v6481_v9 }
 0x1c7   : > { %5712 = vmatmul.mubr.msk.f32.vlgmr.msra.gmra.mxu0 %vm728_vm0, %v6758_v26  ;;  %5725 = vmatprep.subr.mxu0 %v6481_v9 }
 0x1c8   : > { %5767 = vmatmul.mubr.msk.f32.vlgmr.msra.gmra.mxu1 %vm728_vm0, %v6758_v26  ;;  %5780 = vmatprep.subr.mxu1 %v6481_v9 }
 0x1c9   : > { %5726 = vmatpush3.msra.mxu0 %v1095_v51  ;;  %5781 = vmatpush3.msra.mxu1 %v1423_v52  ;;  %v720_v51 = vlaneseq }
 0x1ca   : > { %5727 = vmatprep.subr.mxu0 %v6481_v9  ;;  %5782 = vmatprep.subr.mxu1 %v6481_v9 }
 0x1cb   : > { %5728 = vmatpush3.msra.mxu0 %v1094_v53  ;;  %5783 = vmatpush3.msra.mxu1 %v1422_v54  ;;  %v721_v53 = vshrl.u32 %v720_v51, 7  ;;  %v723_v54 = vand.u32 127, %v720_v51 }
 0x1cc   : > { %5729 = vmatprep.subr.mxu0 %v6481_v9  ;;  %5784 = vmatprep.subr.mxu1 %v6481_v9 }
 0x1cd   : > { %5730 = vmatpush3.msra.mxu0 %v1093_v55  ;;  %5785 = vmatpush3.msra.mxu1 %v1421_v56  ;;  %vm724_vm3 = vcmp.le.s32.totalorder %v723_v54, %v721_v53  ;;  %v6483_v56 = vmov -1e+09  }
 0x1ce   : > { %5731 = vmatprep.subr.mxu0 %v6481_v9  ;;  %5786 = vmatprep.subr.mxu1 %v6481_v9 }
 0x1cf   : > { %5732 = vmatpush3.msra.mxu0 %v1092_v57  ;;  %5733 = vmatprep.mubr.msk.f32.mxu0 %vm6482_vm1, %v6481_v9  ;;  %v6904_v57 = vsel %vm724_vm3, 0.0, %v6483_v56 }
 0x1d0   : > { %5787 = vmatpush3.msra.mxu1 %v1420_v58  ;;  %5788 = vmatprep.mubr.msk.f32.mxu1 %vm6482_vm1, %v6481_v9 }
 0x1d1   : > { %5734 = vmatmul.mubr.msk.f32.vlgmr.msra.gmra.mxu0 %vm728_vm0, %v6758_v26  ;;  %5747 = vmatprep.subr.mxu0 %v6481_v9 }
 0x1d2   : > { %5789 = vmatmul.mubr.msk.f32.vlgmr.msra.gmra.mxu1 %vm728_vm0, %v6758_v26  ;;  %5748 = vmatpush3.msra.mxu0 %v1411_v59 }
 0x1d3   : > { %5749 = vmatprep.subr.mxu0 %v6481_v9  ;;  %5755 = vmatprep.mubr.msk.f32.mxu0 %vm6482_vm1, %v6481_v9 }
 0x1d4   : > { %5750 = vmatpush3.msra.mxu0 %v1410_v60  ;;  %5796 = vmatprep.subr.mxu1 %v6481_v9 }
 0x1d5   : > { %5751 = vmatprep.subr.mxu0 %v6481_v9  ;;  %5798 = vmatprep.mubr.msk.f32.mxu1 %vm6482_vm1, %v6481_v9 }
 0x1d6   : > { %5752 = vmatpush3.msra.mxu0 %v1409_v61 }
 0x1d7   : > { %5753 = vmatprep.subr.mxu0 %v6481_v9 }
 0x1d8   : > { %5754 = vmatpush3.msra.mxu0 %v1408_v62 }
 0x1d9   : > { %5756 = vmatmul.mubr.msk.f32.vlgmr.msra.gmra.mxu0 %vm728_vm0, %v6758_v26  ;;  %5769 = vmatprep.subr.mxu0 %v6481_v9 }
 0x1da   : > { %5770 = vmatpush3.msra.mxu0 %v1419_v63  ;;  %5777 = vmatprep.mubr.msk.f32.mxu0 %vm6482_vm1, %v6481_v9 }
 0x1db   : > { %5771 = vmatprep.subr.mxu0 %v6481_v9 }
 0x1dc   : > { %5772 = vmatpush3.msra.mxu0 %v1418_v0 }
 0x1dd   : > { %5773 = vmatprep.subr.mxu0 %v6481_v9 }
 0x1de   : > { %5774 = vmatpush3.msra.mxu0 %v1417_v1 }
 0x1df   : > { %5775 = vmatprep.subr.mxu0 %v6481_v9 }
 0x1e0   : > { %5776 = vmatpush3.msra.mxu0 %v1416_v3 }
 0x1e1   : > { %5778 = vmatmul.mubr.msk.f32.vlgmr.msra.gmra.mxu0 %vm728_vm0, %v6758_v26  ;;  %5791 = vmatprep.subr.mxu0 %v6481_v9  ;;  %v5332_v26 = vld [vmem:[%s7401_s10 + $0x1] ss:$0 sm:$0xff] }
 0x1e2   : > { %5793 = vmatprep.mubr.msk.f32.mxu0 %vm6482_vm1, %v6481_v9 }
 0x26a   : > { %v870_v4 = vpop.f32.mrf.mxu0  ;;  %v1080_v5 = vpop.f32.mrf.mxu1 }
 0x26b   : > { %v1081_v24 = vadd.f32 %v5318_v20, %v1080_v5  ;;  %v871_v34 = vadd.f32 %v5315_v28, %v870_v4 }
 0x26c   : > { %v5669_v6 = vpop.f32.mrf.mxu0  ;;  %v5702_v7 = vpop.f32.mrf.mxu1 }
 0x273   : > { %v940_v10 = vpop.f32.mrf.mxu0 }
 0x274   : > { %v1264_v11 = vpop.f32.mrf.mxu1  ;;  %v941_v16 = vadd.f32 %v5316_v12, %v940_v10 }
 0x275   : > { %v1265_v13 = vadd.f32 %v5324_v8, %v1264_v11  ;;  %v5680_v14 = vpop.f32.mrf.mxu0 }
 0x276   : > { %v5724_v15 = vpop.f32.mrf.mxu1 }
 0x277   : > { %5797 = vmatpush3.xpose.msk.msra.mxu1 %vm1732_vm2, %v1265_v13 }
 0x278   : > { %5806 = vmatprep.subr.mxu1 %v6481_v9 }
 0x27a   : > { %5799 = vmatmul.mubr.msk.f32.vlgmr.msra.gmra.mxu1 %vm1732_vm2, %v941_v16 }
 0x27b   : > { %5808 = vmatprep.mubr.msk.f32.mxu1 %vm6482_vm1, %v6481_v9 }
 0x27d   : > { %v1010_v18 = vpop.f32.mrf.mxu0 }
 0x27e   : > { %v1404_v19 = vpop.f32.mrf.mxu1  ;;  %v1011_v42 = vadd.f32 %v5317_v37, %v1010_v18 }
 0x27f   : > { %v1405_v21 = vadd.f32 %v5326_v17, %v1404_v19  ;;  %v5691_v22 = vpop.f32.mrf.mxu0 }
 0x280   : > { %v5746_v23 = vpop.f32.mrf.mxu1 }
 0x281   : > { %5807 = vmatpush3.xpose.msk.msra.mxu1 %vm1732_vm2, %v1405_v21 }
 0x282   : > { %5816 = vmatprep.subr.mxu1 %v6481_v9 }
 0x284   : > { %5809 = vmatmul.mubr.msk.f32.vlgmr.msra.gmra.mxu1 %vm1732_vm2, %v1081_v24 }
 0x285   : > { %5818 = vmatprep.mubr.msk.f32.mxu1 %vm6482_vm1, %v6481_v9 }
 0x287   : > { %v1194_v27 = vpop.f32.mrf.mxu0 }
 0x288   : > { %v1195_v29 = vadd.f32 %v5323_v25, %v1194_v27  ;;  %v1588_v30 = vpop.f32.mrf.mxu1 }
 0x289   : > { %v1589_v31 = vadd.f32 %v5332_v26, %v1588_v30  ;;  %v5713_v32 = vpop.f32.mrf.mxu0 }
 0x28a   : > { %v5768_v33 = vpop.f32.mrf.mxu1  ;;  %5792 = vmatpush3.xpose.msk.msra.mxu0 %vm1732_vm2, %v1195_v29  ;;  %v5333_v32 = vld [vmem:[%s7401_s10 + $0x2] ss:$0 sm:$0xff] }
 0x28b   : > { %5817 = vmatpush3.msra.mxu1 %v1589_v31  ;;  %5801 = vmatprep.subr.mxu0 %v6481_v9 }
 0x28c   : > { %5826 = vmatprep.subr.mxu1 %v6481_v9 }
 0x28d   : > { %5794 = vmatmul.mubr.msk.f32.vlgmr.msra.gmra.mxu0 %vm1732_vm2, %v871_v34 }
 0x28e   : > { %5803 = vmatprep.mubr.msk.f32.mxu0 %vm6482_vm1, %v6481_v9 }
 0x291   : > { %v1334_v36 = vpop.f32.mrf.mxu0 }
 0x292   : > { %v1335_v38 = vadd.f32 %v5325_v35, %v1334_v36  ;;  %v6891_v39 = vpop.f32.mrf.mxu1  ;;  %v5334_v36 = vld [vmem:[%s7401_s10 + $0x3] ss:$0 sm:$0xff] }
 0x293   : > { %v5735_v40 = vpop.f32.mrf.mxu0 }
 0x294   : > { %v5790_v41 = vpop.f32.mrf.mxu1  ;;  %5802 = vmatpush3.xpose.msk.msra.mxu0 %vm1732_vm2, %v1335_v38  ;;  %v1729_v40 = vadd.f32 %v5334_v36, %v6891_v39  ;;  %v2373_v39 = vld [vmem:[%s7402_s11] sm:$0xff]  ;;  %v2816_v36 = vld [vmem:[#allocation11 + $0x50] sm:$0xff] }
 0x295   : > { %5811 = vmatprep.subr.mxu0 %v6481_v9 }
 0x297   : > { %5804 = vmatmul.mubr.msk.f32.vlgmr.msra.gmra.mxu0 %vm1732_vm2, %v1011_v42 }
 0x298   : > { %5813 = vmatprep.mubr.msk.f32.mxu0 %vm6482_vm1, %v6481_v9 }
 0x299   : > { %v1518_v44 = vpop.f32.mrf.mxu0 }
 0x29a   : > { %v1519_v45 = vadd.f32 %v5331_v43, %v1518_v44 }
 0x29b   : > { %v5757_v46 = vpop.f32.mrf.mxu0 }
 0x29c   : > { %5812 = vmatpush3.msra.mxu0 %v1519_v45  ;;  %v2374_v45 = vld [vmem:[%s7402_s11 + $0x8] sm:$0xff]  ;;  %v2375_v46 = vld [vmem:[%s7402_s11 + $0x10] sm:$0xff] }
 0x29d   : > { %5821 = vmatprep.subr.mxu0 %v6481_v9 }
 0x2a1   : > { %v6902_v47 = vpop.f32.mrf.mxu0 }
 0x2a2   : > { %v1659_v35 = vadd.f32 %v5333_v32, %v6902_v47  ;;  %v2820_v32 = vld [vmem:[#allocation11 + $0x70] sm:$0xff] }
 0x2a3   : > { %v5779_v48 = vpop.f32.mrf.mxu0 }
 0x33a   : > { %v1881_v49 = vpop.f32.mrf.mxu1 }
 0x33b   : > { %v1882_v61 = vadd.f32 %v1881_v49, %v6904_v57  ;;  %v2376_v49 = vld [vmem:[%s7402_s11 + $0x18] sm:$0xff] }
 0x33c   : > { %v5800_v50 = vpop.f32.mrf.mxu1 }
 0x33d   : > { %v2040_v0 = vsel %vm1732_vm2, %v1882_v61, -inf }
 0x344   : > { %v2033_v52 = vpop.f32.mrf.mxu1 }
 0x345   : > { %v2034_v63 = vadd.f32 %v2033_v52, %v6904_v57 }
 0x346   : > { %v5810_v55 = vpop.f32.mrf.mxu1 }
 0x347   : > { %v2046_v4 = vsel %vm1732_vm2, %v2034_v63, -inf }
 0x34d   : > { %v1805_v58 = vpop.f32.mrf.mxu0 }
 0x34e   : > { %v1806_v59 = vadd.f32 %v1805_v58, %v6904_v57 }
 0x34f   : > { %v5795_v60 = vpop.f32.mrf.mxu0 }
 0x350   : > { %v2037_v62 = vsel %vm1732_vm2, %v1806_v59, -inf }
 0x351   : > { %2038 = vmax.xlane.f32.xlu1 %v2037_v62 }
 0x355   : > { %2041 = vmax.xlane.f32.xlu1 %v2040_v0 }
 0x357   : > { %v1957_v1 = vpop.f32.mrf.mxu0 }
 0x358   : > { %v1958_v3 = vadd.f32 %v1957_v1, %v6904_v57 }
 0x359   : > { %v5805_v5 = vpop.f32.mrf.mxu0  ;;  %2047 = vmax.xlane.f32.xlu1 %v2046_v4 }
 0x35a   : > { %v2043_v6 = vsel %vm1732_vm2, %v1958_v3, -inf }
 0x35b   : > { %2044 = vmax.xlane.f32.xlu0 %v2043_v6 }
 0x3da   : > { %v2039_v7 = vpop.xlane.xlu1 %2038 }
 0x3db   : > { %v2049_v8 = vsub.f32 %v1806_v59, %v2039_v7 }
 0x3dd   : > { %v2053_v10 = vmul.f32 1.442695, %v2049_v8 }
 0x3de   : > { %v2042_v11 = vpop.xlane.xlu1 %2041 }
 0x3df   : > { %6234 = vpow2.f32 %v2053_v10  ;;  %v2050_v12 = vsub.f32 %v1882_v61, %v2042_v11  ;;  %v5355_v10 = vld [vmem:[%s7403_s12] ss:$0 sm:$0xff] }
 0x3e1   : > { %v2055_v13 = vmul.f32 1.442695, %v2050_v12 }
 0x3e2   : > { %v2048_v14 = vpop.xlane.xlu1 %2047 }
 0x3e3   : > { %6236 = vpow2.f32 %v2055_v13  ;;  %v2052_v15 = vsub.f32 %v2034_v63, %v2048_v14 }
 0x3e4   : > { %v2045_v16 = vpop.xlane.xlu0 %2044 }
 0x3e5   : > { %v2059_v17 = vmul.f32 1.442695, %v2052_v15  ;;  %v2051_v18 = vsub.f32 %v1958_v3, %v2045_v16 }
 0x3e7   : > { %6238 = vpow2.f32 %v2059_v17  ;;  %v2057_v19 = vmul.f32 1.442695, %v2051_v18 }
 0x3e9   : > { %6240 = vpow2.f32 %v2057_v19  ;;  %v2717_v19 = vld [vmem:[%s7406_s15 + $0x18] sm:$0xff] }
 0x3ec   : > { %v6235_v20 = vpop.eup %6234 }
 0x3ed   : > { %v2061_v21 = vsel %vm1732_vm2, %v6235_v20, 0.0 }
 0x3ee   : > { %2062 = vadd.xlane.f32.xlu0 %v2061_v21  ;;  %v2714_v21 = vld [vmem:[%s7406_s15] sm:$0xff] }
 0x3f0   : > { %v6237_v22 = vpop.eup %6236 }
 0x3f1   : > { %v2064_v23 = vsel %vm1732_vm2, %v6237_v22, 0.0 }
 0x3f2   : > { %2065 = vadd.xlane.f32.xlu1 %v2064_v23 }
 0x3f4   : > { %v6239_v24 = vpop.eup %6238 }
 0x3f5   : > { %v2070_v25 = vsel %vm1732_vm2, %v6239_v24, 0.0 }
 0x3f6   : > { %v6241_v26 = vpop.eup %6240  ;;  %2071 = vadd.xlane.f32.xlu1 %v2070_v25 }
 0x3f7   : > { %v2067_v27 = vsel %vm1732_vm2, %v6241_v26, 0.0 }
 0x3f8   : > { %2068 = vadd.xlane.f32.xlu0 %v2067_v27 }
 0x477   : > { %v2063_v28 = vpop.xlane.xlu0 %2062 }
 0x478   : > { %6242 = vrcp.f32 %v2063_v28  ;;  %v5357_v28 = vld [vmem:[%s7405_s14] ss:$0 sm:$0xff] }
 0x47b   : > { %v2066_v29 = vpop.xlane.xlu1 %2065 }
 0x47c   : > { %6244 = vrcp.f32 %v2066_v29 }
 0x47f   : > { %v2072_v30 = vpop.xlane.xlu1 %2071 }
 0x480   : > { %6246 = vrcp.f32 %v2072_v30 }
 0x481   : > { %v2069_v31 = vpop.xlane.xlu0 %2068 }
 0x482   : > { %6248 = vrcp.f32 %v2069_v31  ;;  %v2821_v31 = vld [vmem:[#allocation11 + $0x78] sm:$0xff] }
 0x485   : > { %v6243_v33 = vpop.eup %6242 }
 0x486   : > { %v2074_v34 = vmul.f32 %v6243_v33, %v6235_v20  ;;  %v2715_v20 = vld [vmem:[%s7406_s15 + $0x8] sm:$0xff]  ;;  %v2819_v33 = vld [vmem:[#allocation11 + $0x68] sm:$0xff] }
 0x488   : > { %5814 = vmatmul.mubr.msk.f32.vlgmr.msra.gmra.mxu0 %vm1732_vm2, %v2074_v34  ;;  %v2818_v34 = vld [vmem:[#allocation11 + $0x60] sm:$0xff] }
 0x489   : > { %v6245_v37 = vpop.eup %6244  ;;  %5822 = vmatpush3.msra.mxu0 %v1659_v35  ;;  %5823 = vmatprep.mubr.msk.f32.mxu0 %vm6482_vm1, %v6481_v9  ;;  %v2817_v35 = vld [vmem:[#allocation11 + $0x58] sm:$0xff] }
 0x48a   : > { %v2076_v38 = vmul.f32 %v6245_v37, %v6237_v22  ;;  %5831 = vmatprep.subr.mxu0 %v6481_v9  ;;  %v2815_v37 = vld [vmem:[#allocation11 + $0x48] sm:$0xff] }
 0x48c   : > { %5819 = vmatmul.mubr.msk.f32.vlgmr.msra.gmra.mxu1 %vm1732_vm2, %v2076_v38  ;;  %v2814_v38 = vld [vmem:[#allocation11 + $0x40] sm:$0xff] }
 0x48d   : > { %v6247_v41 = vpop.eup %6246  ;;  %5827 = vmatpush3.msra.mxu1 %v1729_v40  ;;  %5828 = vmatprep.mubr.msk.f32.mxu1 %vm6482_vm1, %v6481_v9  ;;  %v2813_v40 = vld [vmem:[#allocation11 + $0x38] sm:$0xff] }
 0x48e   : > { %v2080_v42 = vmul.f32 %v6247_v41, %v6239_v24  ;;  %5836 = vmatprep.subr.mxu1 %v6481_v9  ;;  %v2812_v41 = vld [vmem:[#allocation11 + $0x30] sm:$0xff] }
 0x48f   : > { %v6249_v43 = vpop.eup %6248 }
 0x490   : > { %v2078_v44 = vmul.f32 %v6249_v43, %v6241_v26  ;;  %5829 = vmatmul.mubr.msk.f32.vlgmr.msra.gmra.mxu1 %vm1732_vm2, %v2080_v42  ;;  %v5356_v26 = vld [vmem:[%s7404_s13] ss:$0 sm:$0xff]  ;;  %v2811_v42 = vld [vmem:[#allocation11 + $0x28] sm:$0xff]  ;;  %v2810_v43 = vld [vmem:[#allocation11 + $0x20] sm:$0xff] }
 0x491   : > { %5838 = vmatprep.mubr.msk.f32.mxu1 %vm6482_vm1, %v6481_v9  ;;  %5837 = vmatpush3.msra.mxu1 %v2374_v45  ;;  %v2807_v45 = vld [vmem:[#allocation11 + $0x8] sm:$0xff] }
 0x492   : > { %5824 = vmatmul.mubr.msk.f32.vlgmr.msra.gmra.mxu0 %vm1732_vm2, %v2078_v44  ;;  %5846 = vmatprep.subr.mxu1 %v6481_v9  ;;  %v2809_v44 = vld [vmem:[#allocation11 + $0x18] sm:$0xff] }
 0x493   : > { %5833 = vmatprep.mubr.msk.f32.mxu0 %vm6482_vm1, %v6481_v9  ;;  %5832 = vmatpush3.msra.mxu0 %v2373_v39  ;;  %v2808_v39 = vld [vmem:[#allocation11 + $0x10] sm:$0xff] }
 0x494   : > { %5841 = vmatprep.subr.mxu0 %v6481_v9 }
 0x548   : > { %v2150_v47 = vpop.f32.mrf.mxu0 }
 0x549   : > { %5834 = vmatmul.mubr.msk.f32.vlgmr.msra.gmra.mxu0 %vm1732_vm2, %v2150_v47  ;;  %v5358_v47 = vld [vmem:[%s7451_s3] ss:$0 sm:$0xff] }
 0x54a   : > { %v5815_v48 = vpop.f32.mrf.mxu0  ;;  %5842 = vmatpush3.msra.mxu0 %v2375_v46  ;;  %5843 = vmatprep.mubr.msk.f32.mxu0 %vm6482_vm1, %v6481_v9  ;;  %v2806_v46 = vld [vmem:[#allocation11] sm:$0xff] }
 0x54b   : > { %5851 = vmatprep.subr.mxu0 %v6481_v9 }
 0x54c   : > { %v2223_v50 = vpop.f32.mrf.mxu1 }
 0x54d   : > { %5839 = vmatmul.mubr.msk.f32.vlgmr.msra.gmra.mxu1 %vm1732_vm2, %v2223_v50 }
 0x54e   : > { %v5820_v51 = vpop.f32.mrf.mxu1  ;;  %5847 = vmatpush3.msra.mxu1 %v2376_v49  ;;  %5848 = vmatprep.mubr.msk.f32.mxu1 %vm6482_vm1, %v6481_v9 }
 0x54f   : > { %5862 = vmatprep.subr.mxu1 %v6481_v9 }
 0x550   : > { %v2369_v52 = vpop.f32.mrf.mxu1 }
 0x551   : > { %5849 = vmatmul.mubr.msk.f32.vlgmr.msra.gmra.mxu1 %vm1732_vm2, %v2369_v52 }
 0x552   : > { %v2296_v53 = vpop.f32.mrf.mxu0  ;;  %v5830_v54 = vpop.f32.mrf.mxu1  ;;  %5894 = vmatprep.mubr.msk.f32.mxu1 %vm6482_vm1, %v6481_v9  ;;  %5863 = vmatpush3.msra.mxu1 %v2821_v31  ;;  %v2944_v31 = vld [vmem:[#allocation5 + $0xd8] sm:$0xff] }
 0x553   : > { %5844 = vmatmul.mubr.msk.f32.vlgmr.msra.gmra.mxu0 %vm1732_vm2, %v2296_v53  ;;  %5864 = vmatprep.subr.mxu1 %v6481_v9 }
 0x554   : > { %v5825_v55 = vpop.f32.mrf.mxu0  ;;  %5859 = vmatprep.mubr.msk.f32.mxu0 %vm6482_vm1, %v6481_v9  ;;  %5852 = vmatpush3.msra.mxu0 %v2717_v19  ;;  %v5364_v19 = vld [vmem:[%s7448_s6 + $0x1] ss:$0 sm:$0xff]  ;;  %s6404_s6 = scalar_lea.vmem %s6403_s24, 32 }
 0x555   : > { %5853 = vmatprep.subr.mxu0 %v6481_v9  ;;  %5865 = vmatpush3.msra.mxu1 %v2820_v32  ;;  %v3591_v32 = vld [vmem:[#allocation10 + $0x98] sm:$0xff] }
 0x556   : > { %5866 = vmatprep.subr.mxu1 %v6481_v9 }
 0x557   : > { %5867 = vmatpush3.msra.mxu1 %v2819_v33  ;;  %v2943_v33 = vld [vmem:[#allocation5 + $0xd0] sm:$0xff] }
 0x558   : > { %5868 = vmatprep.subr.mxu1 %v6481_v9 }
 0x559   : > { %5869 = vmatpush3.msra.mxu1 %v2818_v34  ;;  %v3590_v34 = vld [vmem:[#allocation10 + $0x90] sm:$0xff] }
 0x55a   : > { %5870 = vmatprep.subr.mxu1 %v6481_v9 }
 0x55b   : > { %5871 = vmatpush3.msra.mxu1 %v2817_v35  ;;  %v2942_v35 = vld [vmem:[#allocation5 + $0xc8] sm:$0xff] }
 0x55c   : > { %5872 = vmatprep.subr.mxu1 %v6481_v9 }
 0x55d   : > { %5873 = vmatpush3.msra.mxu1 %v2816_v36  ;;  %v3589_v36 = vld [vmem:[#allocation10 + $0x88] sm:$0xff] }
 0x55e   : > { %5874 = vmatprep.subr.mxu1 %v6481_v9 }
 0x55f   : > { %5875 = vmatpush3.msra.mxu1 %v2815_v37  ;;  %v2941_v37 = vld [vmem:[#allocation5 + $0xc0] sm:$0xff] }
 0x560   : > { %5876 = vmatprep.subr.mxu1 %v6481_v9 }
 0x561   : > { %5877 = vmatpush3.msra.mxu1 %v2814_v38  ;;  %v3588_v38 = vld [vmem:[#allocation10 + $0x80] sm:$0xff] }
 0x562   : > { %5878 = vmatprep.subr.mxu1 %v6481_v9 }
 0x563   : > { %5879 = vmatpush3.msra.mxu1 %v2813_v40  ;;  %v2948_v40 = vld [vmem:[#allocation5 + $0xf8] sm:$0xff] }
 0x564   : > { %5880 = vmatprep.subr.mxu1 %v6481_v9 }
 0x565   : > { %5881 = vmatpush3.msra.mxu1 %v2812_v41  ;;  %v3599_v41 = vld [vmem:[#allocation10 + $0xd8] sm:$0xff] }
 0x566   : > { %5882 = vmatprep.subr.mxu1 %v6481_v9 }
 0x567   : > { %5883 = vmatpush3.msra.mxu1 %v2811_v42  ;;  %v2947_v42 = vld [vmem:[#allocation5 + $0xf0] sm:$0xff] }
 0x568   : > { %5884 = vmatprep.subr.mxu1 %v6481_v9 }
 0x569   : > { %5885 = vmatpush3.msra.mxu1 %v2810_v43  ;;  %v3598_v43 = vld [vmem:[#allocation10 + $0xd0] sm:$0xff] }
 0x56a   : > { %5886 = vmatprep.subr.mxu1 %v6481_v9 }
 0x56b   : > { %5887 = vmatpush3.msra.mxu1 %v2809_v44  ;;  %v2946_v44 = vld [vmem:[#allocation5 + $0xe8] sm:$0xff] }
 0x56c   : > { %5888 = vmatprep.subr.mxu1 %v6481_v9 }
 0x56d   : > { %5889 = vmatpush3.msra.mxu1 %v2808_v39  ;;  %v3597_v39 = vld [vmem:[#allocation10 + $0xc8] sm:$0xff] }
 0x56e   : > { %5890 = vmatprep.subr.mxu1 %v6481_v9 }
 0x56f   : > { %5891 = vmatpush3.msra.mxu1 %v2807_v45  ;;  %v2945_v45 = vld [vmem:[#allocation5 + $0xe0] sm:$0xff] }
 0x570   : > { %5892 = vmatprep.subr.mxu1 %v6481_v9 }
 0x571   : > { %5893 = vmatpush3.msra.mxu1 %v2806_v46  ;;  %v3596_v46 = vld [vmem:[#allocation10 + $0xc0] sm:$0xff] }
 0x572   : > { %5941 = vmatprep.subr.mxu1 %v6481_v9 }
 0x609   : > { %v2446_v56 = vpop.f32.mrf.mxu0 }
 0x60a   : > { %v2669_v63 = vsel %vm728_vm0, %v2446_v56, 0.0 }
 0x60b   : > { %v5835_v58 = vpop.f32.mrf.mxu0 }
 0x60d   : > { %v2519_v59 = vpop.f32.mrf.mxu1 }
 0x60e   : > { %v2670_v61 = vsel %vm728_vm0, %v2519_v59, 0.0  ;;  %v5361_v59 = vld [vmem:[%s7409_s18] ss:$0 sm:$0xff] }
 0x60f   : > { %v5840_v60 = vpop.f32.mrf.mxu1  ;;  %v2671_v0 = vadd.f32 %v2670_v61, %v2669_v63 }
 0x611   : > { %v2665_v62 = vpop.f32.mrf.mxu1 }
 0x612   : > { %v2674_v7 = vsel %vm728_vm0, %v2665_v62, 0.0 }
 0x613   : > { %v2592_v1 = vpop.f32.mrf.mxu0  ;;  %v5850_v3 = vpop.f32.mrf.mxu1 }
 0x614   : > { %v2672_v4 = vsel %vm728_vm0, %v2592_v1, 0.0 }
 0x615   : > { %v2673_v5 = vadd.f32 %v2672_v4, %v2671_v0  ;;  %v5845_v6 = vpop.f32.mrf.mxu0 }
 0x616   : > { %v2936_v6 = vld [vmem:[#allocation5 + $0x98] sm:$0xff] }
 0x617   : > { %v2675_v8 = vadd.f32 %v2674_v7, %v2673_v5  ;;  %v3265_v7 = vld [vmem:[#allocation8 + $0x98] sm:$0xff] }
 0x619   : > { %v2676_v11 = vadd.f32 %v2675_v8, %v6732_v2  ;;  %v2716_v2 = vld [vmem:[%s7406_s15 + $0x10] sm:$0xff]  ;;  %v2935_v8 = vld [vmem:[#allocation5 + $0x90] sm:$0xff] }
 0x61a   : > { %5854 = vmatpush3.msra.mxu0 %v2716_v2 }
 0x61b   : > { %v6976_v12 = vadd.f32 %v5355_v10, %v2676_v11  ;;  %5855 = vmatprep.subr.mxu0 %v6481_v9  ;;  %v3264_v10 = vld [vmem:[#allocation8 + $0x90] sm:$0xff]  ;;  %v2934_v11 = vld [vmem:[#allocation5 + $0x88] sm:$0xff] }
 0x61c   : > { %5856 = vmatpush3.msra.mxu0 %v2715_v20  ;;  %v5365_v20 = vld [vmem:[%s7449_s29 + $0x1] ss:$0 sm:$0xff] }
 0x61d   : > { %v2687_v13 = vsel %vm728_vm0, %v6976_v12, 0.0  ;;  %5857 = vmatprep.subr.mxu0 %v6481_v9 }
 0x61e   : > { %2688 = vadd.xlane.f32.xlu0 %v2687_v13  ;;  %5858 = vmatpush3.msra.mxu0 %v2714_v21  ;;  %v2933_v13 = vld [vmem:[#allocation5 + $0x80] sm:$0xff] }
 0x61f   : > { %5897 = vmatprep.subr.mxu0 %v6481_v9 }
 0x6a7   : > { %v2689_v14 = vpop.xlane.xlu0 %2688 }
 0x6a8   : > { %v2690_v15 = vmul.f32 0.03125, %v2689_v14  ;;  %v3262_v14 = vld [vmem:[#allocation8 + $0x80] sm:$0xff] }
 0x6aa   : > { %v2691_v16 = vsub.f32 %v6976_v12, %v2690_v15 }
 0x6ac   : > { %v2692_v17 = vmul.f32 %v2691_v16, %v2691_v16 }
 0x6ae   : > { %v2693_v18 = vsel %vm728_vm0, %v2692_v17, 0.0 }
 0x6af   : > { %2694 = vadd.xlane.f32.xlu1 %v2693_v18 }
 0x738   : > { %v2695_v22 = vpop.xlane.xlu1 %2694 }
 0x739   : > { %v2696_v23 = vmul.f32 0.03125, %v2695_v22 }
 0x73b   : > { %v2697_v24 = vadd.f32 1e-05, %v2696_v23  ;;  %v2940_v23 = vld [vmem:[#allocation5 + $0xb8] sm:$0xff] }
 0x73d   : > { %6250 = vrsqrt.f32 %v2697_v24  ;;  %v3273_v24 = vld [vmem:[#allocation8 + $0xd8] sm:$0xff] }
 0x74a   : > { %v6251_v25 = vpop.eup %6250 }
 0x74b   : > { %v2699_v27 = vmul.f32 %v6251_v25, %v2691_v16  ;;  %v2939_v25 = vld [vmem:[#allocation5 + $0xb0] sm:$0xff] }
 0x74d   : > { %v2706_v29 = vmul.f32 %v5356_v26, %v2699_v27  ;;  %v3272_v26 = vld [vmem:[#allocation8 + $0xd0] sm:$0xff]  ;;  %v2938_v27 = vld [vmem:[#allocation5 + $0xa8] sm:$0xff] }
 0x74f   : > { %v2713_v30 = vadd.f32 %v5357_v28, %v2706_v29  ;;  %v3271_v28 = vld [vmem:[#allocation8 + $0xc8] sm:$0xff]  ;;  %v2937_v29 = vld [vmem:[#allocation5 + $0xa0] sm:$0xff] }
 0x751   : > { %5860 = vmatmul.mubr.msk.f32.vlgmr.msra.gmra.mxu0 %vm728_vm0, %v2713_v30  ;;  %v3270_v30 = vld [vmem:[#allocation8 + $0xc0] sm:$0xff] }
 0x752   : > { %5905 = vmatprep.mubr.msk.f32.mxu0 %vm6482_vm1, %v6481_v9  ;;  %5898 = vmatpush3.msra.mxu0 %v2936_v6 }
 0x753   : > { %5899 = vmatprep.subr.mxu0 %v6481_v9 }
 0x754   : > { %5900 = vmatpush3.msra.mxu0 %v2935_v8 }
 0x755   : > { %5901 = vmatprep.subr.mxu0 %v6481_v9 }
 0x756   : > { %5902 = vmatpush3.msra.mxu0 %v2934_v11  ;;  %v5384_v11 = vld [vmem:[%s7399_s8 + $0x6] ss:$0 sm:$0xff] }
 0x757   : > { %5903 = vmatprep.subr.mxu0 %v6481_v9 }
 0x758   : > { %5904 = vmatpush3.msra.mxu0 %v2933_v13 }
 0x759   : > { %5908 = vmatprep.subr.mxu0 %v6481_v9 }
 0x811   : > { %v2794_v48 = vpop.f32.mrf.mxu0 }
 0x812   : > { %v2795_v49 = vadd.f32 %v5358_v47, %v2794_v48  ;;  %v3269_v47 = vld [vmem:[#allocation8 + $0xb8] sm:$0xff]  ;;  %v3268_v48 = vld [vmem:[#allocation8 + $0xb0] sm:$0xff] }
 0x813   : > { %v5861_v50 = vpop.f32.mrf.mxu0 }
 0x814   : > { %v5360_v51 = vmul.f32 -1.702, %v2795_v49  ;;  %v3266_v50 = vld [vmem:[#allocation8 + $0xa0] sm:$0xff] }
 0x816   : > { %v2800_v52 = vmul.f32 1.442695, %v5360_v51  ;;  %v3277_v51 = vld [vmem:[#allocation8 + $0xf8] sm:$0xff] }
 0x818   : > { %6252 = vpow2.f32 %v2800_v52  ;;  %v3276_v52 = vld [vmem:[#allocation8 + $0xf0] sm:$0xff] }
 0x825   : > { %v6253_v53 = vpop.eup %6252 }
 0x826   : > { %v2802_v54 = vadd.f32 1.0, %v6253_v53  ;;  %v3275_v53 = vld [vmem:[#allocation8 + $0xe8] sm:$0xff] }
 0x828   : > { %6254 = vrcp.f32 %v2802_v54  ;;  %v3274_v54 = vld [vmem:[#allocation8 + $0xe0] sm:$0xff] }
 0x835   : > { %v6255_v55 = vpop.eup %6254 }
 0x836   : > { %v2805_v56 = vmul.f32 %v6255_v55, %v2795_v49  ;;  %v3267_v49 = vld [vmem:[#allocation8 + $0xa8] sm:$0xff]  ;;  %v3595_v55 = vld [vmem:[#allocation10 + $0xb8] sm:$0xff] }
 0x838   : > { %5895 = vmatmul.mubr.f32.vlgmr.msra.gmra.mxu1 %v2805_v56  ;;  %v3594_v56 = vld [vmem:[#allocation10 + $0xb0] sm:$0xff] }
 0x839   : > { %5949 = vmatprep.mubr.msk.f32.mxu1 %vm6482_vm1, %v6481_v9  ;;  %5942 = vmatpush3.msra.mxu1 %v3265_v7 }
 0x83a   : > { %5943 = vmatprep.subr.mxu1 %v6481_v9 }
 0x83b   : > { %5944 = vmatpush3.msra.mxu1 %v3264_v10 }
 0x83c   : > { %5945 = vmatprep.subr.mxu1 %v6481_v9 }
 0x8f8   : > { %v2888_v58 = vpop.f32.mrf.mxu1 }
 0x8f9   : > { %v2892_v60 = vadd.f32 %v2888_v58, %v6976_v12  ;;  %v3263_v12 = vld [vmem:[#allocation8 + $0x88] sm:$0xff] }
 0x8fa   : > { %v5896_v61 = vpop.f32.mrf.mxu1  ;;  %5946 = vmatpush3.msra.mxu1 %v3263_v12  ;;  %v3593_v58 = vld [vmem:[#allocation10 + $0xa8] sm:$0xff] }
 0x8fb   : > { %v7032_v62 = vadd.f32 %v5361_v59, %v2892_v60  ;;  %5947 = vmatprep.subr.mxu1 %v6481_v9  ;;  %v3592_v59 = vld [vmem:[#allocation10 + $0xa0] sm:$0xff]  ;;  %v3603_v60 = vld [vmem:[#allocation10 + $0xf8] sm:$0xff]  ;;  %v3602_v61 = vld [vmem:[#allocation10 + $0xf0] sm:$0xff] }
 0x8fc   : > { %5948 = vmatpush3.msra.mxu1 %v3262_v14 }
 0x8fd   : > { %v2905_v63 = vsel %vm728_vm0, %v7032_v62, 0.0  ;;  %5963 = vmatprep.subr.mxu1 %v6481_v9 }
 0x8fe   : > { %2906 = vadd.xlane.f32.xlu0 %v2905_v63  ;;  %v3601_v63 = vld [vmem:[#allocation10 + $0xe8] sm:$0xff] }
 0x987   : > { %v2907_v0 = vpop.xlane.xlu0 %2906 }
 0x988   : > { %v2908_v1 = vmul.f32 0.03125, %v2907_v0  ;;  %v3600_v0 = vld [vmem:[#allocation10 + $0xe0] sm:$0xff] }
 0x98a   : > { %v2909_v3 = vsub.f32 %v7032_v62, %v2908_v1  ;;  %v5382_v1 = vld [vmem:[%s7399_s8 + $0x4] ss:$0 sm:$0xff] }
 0x98c   : > { %v2910_v4 = vmul.f32 %v2909_v3, %v2909_v3 }
 0x98e   : > { %v2911_v5 = vsel %vm728_vm0, %v2910_v4, 0.0 }
 0x98f   : > { %2912 = vadd.xlane.f32.xlu1 %v2911_v5  ;;  %v5370_v5 = vld [vmem:[%s7450_s25 + $0x4] ss:$0 sm:$0xff] }
 0xa18   : > { %v2913_v15 = vpop.xlane.xlu1 %2912 }
 0xa19   : > { %v2914_v16 = vmul.f32 0.03125, %v2913_v15 }
 0xa1b   : > { %v2915_v17 = vadd.f32 1e-05, %v2914_v16 }
 0xa1d   : > { %6256 = vrsqrt.f32 %v2915_v17  ;;  %v5372_v17 = vld [vmem:[%s7450_s25 + $0x6] ss:$0 sm:$0xff] }
 0xa2a   : > { %v6257_v18 = vpop.eup %6256 }
 0xa2b   : > { %v2917_v2 = vmul.f32 %v6257_v18, %v2909_v3  ;;  %v5394_v18 = vld [vmem:[%s7401_s10 + $0x4] ss:$0 sm:$0xff] }
 0xa2d   : > { %v2924_v21 = vmul.f32 %v5364_v19, %v2917_v2 }
 0xa2f   : > { %v7052_v22 = vadd.f32 %v5365_v20, %v2924_v21 }
 0xa31   : > { %5906 = vmatmul.mubr.msk.f32.vlgmr.msra.gmra.mxu0 %vm728_vm0, %v7052_v22  ;;  %5950 = vmatmul.mubr.msk.f32.vlgmr.msra.gmra.mxu1 %vm728_vm0, %v7052_v22 }
 0xa32   : > { %5909 = vmatpush3.msra.mxu0 %v2940_v23  ;;  %5964 = vmatpush3.msra.mxu1 %v3273_v24 }
 0xa33   : > { %5910 = vmatprep.subr.mxu0 %v6481_v9  ;;  %5965 = vmatprep.subr.mxu1 %v6481_v9 }
 0xa34   : > { %5911 = vmatpush3.msra.mxu0 %v2939_v25  ;;  %5966 = vmatpush3.msra.mxu1 %v3272_v26 }
 0xa35   : > { %5912 = vmatprep.subr.mxu0 %v6481_v9  ;;  %5967 = vmatprep.subr.mxu1 %v6481_v9 }
 0xa36   : > { %5913 = vmatpush3.msra.mxu0 %v2938_v27  ;;  %5968 = vmatpush3.msra.mxu1 %v3271_v28  ;;  %v5383_v28 = vld [vmem:[%s7399_s8 + $0x5] ss:$0 sm:$0xff] }
 0xa37   : > { %5914 = vmatprep.subr.mxu0 %v6481_v9  ;;  %5969 = vmatprep.subr.mxu1 %v6481_v9 }
 0xa38   : > { %5915 = vmatpush3.msra.mxu0 %v2937_v29  ;;  %5916 = vmatprep.mubr.msk.f32.mxu0 %vm6482_vm1, %v6481_v9 }
 0xa39   : > { %5970 = vmatpush3.msra.mxu1 %v3270_v30  ;;  %5971 = vmatprep.mubr.msk.f32.mxu1 %vm6482_vm1, %v6481_v9  ;;  %v5371_v30 = vld [vmem:[%s7450_s25 + $0x5] ss:$0 sm:$0xff] }
 0xa3a   : > { %5917 = vmatmul.mubr.msk.f32.vlgmr.msra.gmra.mxu0 %vm728_vm0, %v7052_v22  ;;  %5919 = vmatprep.subr.mxu0 %v6481_v9 }
 0xa3b   : > { %5972 = vmatmul.mubr.msk.f32.vlgmr.msra.gmra.mxu1 %vm728_vm0, %v7052_v22  ;;  %5985 = vmatprep.subr.mxu1 %v6481_v9 }
 0xa3c   : > { %5920 = vmatpush3.msra.mxu0 %v2944_v31  ;;  %5986 = vmatpush3.msra.mxu1 %v3591_v32 }
 0xa3d   : > { %5921 = vmatprep.subr.mxu0 %v6481_v9  ;;  %5987 = vmatprep.subr.mxu1 %v6481_v9 }
 0xa3e   : > { %5922 = vmatpush3.msra.mxu0 %v2943_v33  ;;  %5988 = vmatpush3.msra.mxu1 %v3590_v34  ;;  %v5385_v34 = vld [vmem:[%s7399_s8 + $0x7] ss:$0 sm:$0xff] }
 0xa3f   : > { %5923 = vmatprep.subr.mxu0 %v6481_v9  ;;  %5989 = vmatprep.subr.mxu1 %v6481_v9 }
 0xa40   : > { %5924 = vmatpush3.msra.mxu0 %v2942_v35  ;;  %5990 = vmatpush3.msra.mxu1 %v3589_v36  ;;  %v5373_v36 = vld [vmem:[%s7450_s25 + $0x7] ss:$0 sm:$0xff] }
 0xa41   : > { %5925 = vmatprep.subr.mxu0 %v6481_v9  ;;  %5991 = vmatprep.subr.mxu1 %v6481_v9 }
 0xa42   : > { %5926 = vmatpush3.msra.mxu0 %v2941_v37  ;;  %5927 = vmatprep.mubr.msk.f32.mxu0 %vm6482_vm1, %v6481_v9 }
 0xa43   : > { %5992 = vmatpush3.msra.mxu1 %v3588_v38  ;;  %5993 = vmatprep.mubr.msk.f32.mxu1 %vm6482_vm1, %v6481_v9 }
 0xa44   : > { %5928 = vmatmul.mubr.msk.f32.vlgmr.msra.gmra.mxu0 %vm728_vm0, %v7052_v22  ;;  %5930 = vmatprep.subr.mxu0 %v6481_v9 }
 0xa45   : > { %5994 = vmatmul.mubr.msk.f32.vlgmr.msra.gmra.mxu1 %vm728_vm0, %v7052_v22  ;;  %6007 = vmatprep.subr.mxu1 %v6481_v9 }
 0xa46   : > { %5931 = vmatpush3.msra.mxu0 %v2948_v40  ;;  %6008 = vmatpush3.msra.mxu1 %v3599_v41  ;;  %v5395_v41 = vld [vmem:[%s7401_s10 + $0x5] ss:$0 sm:$0xff] }
 0xa47   : > { %5932 = vmatprep.subr.mxu0 %v6481_v9  ;;  %6009 = vmatprep.subr.mxu1 %v6481_v9 }
 0xa48   : > { %5933 = vmatpush3.msra.mxu0 %v2947_v42  ;;  %6010 = vmatpush3.msra.mxu1 %v3598_v43 }
 0xa49   : > { %5934 = vmatprep.subr.mxu0 %v6481_v9  ;;  %6011 = vmatprep.subr.mxu1 %v6481_v9 }
 0xa4a   : > { %5935 = vmatpush3.msra.mxu0 %v2946_v44  ;;  %6012 = vmatpush3.msra.mxu1 %v3597_v39 }
 0xa4b   : > { %5936 = vmatprep.subr.mxu0 %v6481_v9  ;;  %6013 = vmatprep.subr.mxu1 %v6481_v9 }
 0xa4c   : > { %5937 = vmatpush3.msra.mxu0 %v2945_v45  ;;  %5938 = vmatprep.mubr.msk.f32.mxu0 %vm6482_vm1, %v6481_v9 }
 0xa4d   : > { %6014 = vmatpush3.msra.mxu1 %v3596_v46  ;;  %6015 = vmatprep.mubr.msk.f32.mxu1 %vm6482_vm1, %v6481_v9 }
 0xa4e   : > { %5939 = vmatmul.mubr.msk.f32.vlgmr.msra.gmra.mxu0 %vm728_vm0, %v7052_v22  ;;  %5952 = vmatprep.subr.mxu0 %v6481_v9 }
 0xa4f   : > { %6016 = vmatmul.mubr.msk.f32.vlgmr.msra.gmra.mxu1 %vm728_vm0, %v7052_v22  ;;  %5953 = vmatpush3.msra.mxu0 %v3269_v47 }
 0xa50   : > { %5954 = vmatprep.subr.mxu0 %v6481_v9  ;;  %5960 = vmatprep.mubr.msk.f32.mxu0 %vm6482_vm1, %v6481_v9 }
 0xa51   : > { %5955 = vmatpush3.msra.mxu0 %v3268_v48  ;;  %6029 = vmatprep.subr.mxu1 %v6481_v9 }
 0xa52   : > { %5956 = vmatprep.subr.mxu0 %v6481_v9  ;;  %6031 = vmatprep.mubr.msk.f32.mxu1 %vm6482_vm1, %v6481_v9 }
 0xa53   : > { %5957 = vmatpush3.msra.mxu0 %v3267_v49 }
 0xa54   : > { %5958 = vmatprep.subr.mxu0 %v6481_v9 }
 0xa55   : > { %5959 = vmatpush3.msra.mxu0 %v3266_v50 }
 0xa56   : > { %5961 = vmatmul.mubr.msk.f32.vlgmr.msra.gmra.mxu0 %vm728_vm0, %v7052_v22  ;;  %5974 = vmatprep.subr.mxu0 %v6481_v9 }
 0xa57   : > { %5975 = vmatpush3.msra.mxu0 %v3277_v51  ;;  %5982 = vmatprep.mubr.msk.f32.mxu0 %vm6482_vm1, %v6481_v9 }
 0xa58   : > { %5976 = vmatprep.subr.mxu0 %v6481_v9 }
 0xa59   : > { %5977 = vmatpush3.msra.mxu0 %v3276_v52 }
 0xa5a   : > { %5978 = vmatprep.subr.mxu0 %v6481_v9 }
 0xa5b   : > { %5979 = vmatpush3.msra.mxu0 %v3275_v53 }
 0xa5c   : > { %5980 = vmatprep.subr.mxu0 %v6481_v9 }
 0xa5d   : > { %5981 = vmatpush3.msra.mxu0 %v3274_v54 }
 0xa5e   : > { %5983 = vmatmul.mubr.msk.f32.vlgmr.msra.gmra.mxu0 %vm728_vm0, %v7052_v22  ;;  %5996 = vmatprep.subr.mxu0 %v6481_v9 }
 0xa5f   : > { %5997 = vmatpush3.msra.mxu0 %v3595_v55  ;;  %6004 = vmatprep.mubr.msk.f32.mxu0 %vm6482_vm1, %v6481_v9 }
 0xa60   : > { %5998 = vmatprep.subr.mxu0 %v6481_v9 }
 0xa61   : > { %5999 = vmatpush3.msra.mxu0 %v3594_v56 }
 0xa62   : > { %6000 = vmatprep.subr.mxu0 %v6481_v9 }
 0xa63   : > { %6001 = vmatpush3.msra.mxu0 %v3593_v58 }
 0xa64   : > { %6002 = vmatprep.subr.mxu0 %v6481_v9 }
 0xa65   : > { %6003 = vmatpush3.msra.mxu0 %v3592_v59 }
 0xa66   : > { %6005 = vmatmul.mubr.msk.f32.vlgmr.msra.gmra.mxu0 %vm728_vm0, %v7052_v22  ;;  %6018 = vmatprep.subr.mxu0 %v6481_v9 }
 0xa67   : > { %6019 = vmatpush3.msra.mxu0 %v3603_v60  ;;  %6026 = vmatprep.mubr.msk.f32.mxu0 %vm6482_vm1, %v6481_v9 }
 0xa68   : > { %6020 = vmatprep.subr.mxu0 %v6481_v9 }
 0xa69   : > { %6021 = vmatpush3.msra.mxu0 %v3602_v61 }
 0xa6a   : > { %6022 = vmatprep.subr.mxu0 %v6481_v9 }
 0xa6b   : > { %6023 = vmatpush3.msra.mxu0 %v3601_v63 }
 0xa6c   : > { %6024 = vmatprep.subr.mxu0 %v6481_v9 }
 0xa6d   : > { %6025 = vmatpush3.msra.mxu0 %v3600_v0 }
 0xa6e   : > { %6027 = vmatmul.mubr.msk.f32.vlgmr.msra.gmra.mxu0 %vm728_vm0, %v7052_v22  ;;  %6039 = vmatprep.subr.mxu0 %v6481_v9 }
 0xa6f   : > { %6041 = vmatprep.mubr.msk.f32.mxu0 %vm6482_vm1, %v6481_v9 }
 0xaf1   : > { %v3047_v3 = vpop.f32.mrf.mxu0  ;;  %v3373_v4 = vpop.f32.mrf.mxu1 }
 0xaf2   : > { %v3374_v6 = vadd.f32 %v5382_v1, %v3373_v4  ;;  %v3048_v10 = vadd.f32 %v5370_v5, %v3047_v3 }
 0xaf3   : > { %v5907_v7 = vpop.f32.mrf.mxu0  ;;  %v5951_v8 = vpop.f32.mrf.mxu1 }
 0xaf4   : > { %6030 = vmatpush3.xpose.msk.msra.mxu1 %vm1732_vm2, %v3374_v6 }
 0xaf5   : > { %6034 = vmatprep.subr.mxu1 %v6481_v9 }
 0xaf7   : > { %6032 = vmatmul.mubr.msk.f32.vlgmr.msra.gmra.mxu1 %vm1732_vm2, %v3048_v10 }
 0xaf8   : > { %6036 = vmatprep.mubr.msk.f32.mxu1 %vm6482_vm1, %v6481_v9 }
 0xafa   : > { %v3117_v12 = vpop.f32.mrf.mxu0 }
 0xafb   : > { %v3513_v13 = vpop.f32.mrf.mxu1  ;;  %v3118_v33 = vadd.f32 %v5371_v30, %v3117_v12  ;;  %v5397_v30 = vld [vmem:[%s7401_s10 + $0x7] ss:$0 sm:$0xff] }
 0xafc   : > { %v3514_v14 = vadd.f32 %v5384_v11, %v3513_v13  ;;  %v5918_v15 = vpop.f32.mrf.mxu0 }
 0xafd   : > { %v5973_v16 = vpop.f32.mrf.mxu1 }
 0xafe   : > { %6040 = vmatpush3.xpose.msk.msra.mxu0 %vm1732_vm2, %v3514_v14 }
 0xaff   : > { %6049 = vmatprep.subr.mxu0 %v6481_v9 }
 0xb04   : > { %v3187_v19 = vpop.f32.mrf.mxu0 }
 0xb05   : > { %v3188_v2 = vadd.f32 %v5372_v17, %v3187_v19  ;;  %v3699_v20 = vpop.f32.mrf.mxu1 }
 0xb06   : > { %v3700_v21 = vadd.f32 %v5394_v18, %v3699_v20  ;;  %v5929_v22 = vpop.f32.mrf.mxu0 }
 0xb07   : > { %v5995_v23 = vpop.f32.mrf.mxu1  ;;  %6042 = vmatmul.mubr.msk.f32.vlgmr.msra.gmra.mxu0 %vm1732_vm2, %v3188_v2 }
 0xb08   : > { %6050 = vmatpush3.msra.mxu0 %v3700_v21  ;;  %6051 = vmatprep.mubr.msk.f32.mxu0 %vm6482_vm1, %v6481_v9  ;;  %v5396_v21 = vld [vmem:[%s7401_s10 + $0x6] ss:$0 sm:$0xff] }
 0xb09   : > { %6059 = vmatprep.subr.mxu0 %v6481_v9 }
 0xb0e   : > { %v3257_v24 = vpop.f32.mrf.mxu0 }
 0xb0f   : > { %v7168_v25 = vpop.f32.mrf.mxu1  ;;  %v3258_v40 = vadd.f32 %v5373_v36, %v3257_v24  ;;  %v5414_v36 = vld [vmem:[%s7402_s11 + $0x20] sm:$0xff] }
 0xb10   : > { %v5940_v26 = vpop.f32.mrf.mxu0  ;;  %v3840_v24 = vadd.f32 %v5396_v21, %v7168_v25 }
 0xb11   : > { %v6017_v27 = vpop.f32.mrf.mxu1 }
 0xb16   : > { %v3443_v29 = vpop.f32.mrf.mxu0 }
 0xb17   : > { %v3444_v31 = vadd.f32 %v5383_v28, %v3443_v29 }
 0xb18   : > { %v5962_v32 = vpop.f32.mrf.mxu0 }
 0xb19   : > { %6035 = vmatpush3.xpose.msk.msra.mxu1 %vm1732_vm2, %v3444_v31 }
 0xb1a   : > { %6044 = vmatprep.subr.mxu1 %v6481_v9 }
 0xb1c   : > { %6037 = vmatmul.mubr.msk.f32.vlgmr.msra.gmra.mxu1 %vm1732_vm2, %v3118_v33 }
 0xb1d   : > { %6046 = vmatprep.mubr.msk.f32.mxu1 %vm6482_vm1, %v6481_v9 }
 0xb1e   : > { %v3583_v35 = vpop.f32.mrf.mxu0 }
 0xb1f   : > { %v3584_v37 = vadd.f32 %v5385_v34, %v3583_v35 }
 0xb20   : > { %v5984_v38 = vpop.f32.mrf.mxu0 }
 0xb21   : > { %6045 = vmatpush3.xpose.msk.msra.mxu1 %vm1732_vm2, %v3584_v37  ;;  %v5415_v37 = vld [vmem:[%s7402_s11 + $0x28] sm:$0xff]  ;;  %v5416_v38 = vld [vmem:[%s7402_s11 + $0x30] sm:$0xff] }
 0xb22   : > { %6054 = vmatprep.subr.mxu1 %v6481_v9 }
 0xb24   : > { %6047 = vmatmul.mubr.msk.f32.vlgmr.msra.gmra.mxu1 %vm1732_vm2, %v3258_v40 }
 0xb25   : > { %6056 = vmatprep.mubr.msk.f32.mxu1 %vm6482_vm1, %v6481_v9 }
 0xb26   : > { %v3769_v42 = vpop.f32.mrf.mxu0 }
 0xb27   : > { %v3770_v43 = vadd.f32 %v5395_v41, %v3769_v42 }
 0xb28   : > { %v6006_v44 = vpop.f32.mrf.mxu0 }
 0xb29   : > { %6055 = vmatpush3.msra.mxu1 %v3770_v43  ;;  %v5417_v44 = vld [vmem:[%s7402_s11 + $0x38] sm:$0xff] }
 0xb2a   : > { %6064 = vmatprep.subr.mxu1 %v6481_v9 }
 0xb2e   : > { %v7196_v39 = vpop.f32.mrf.mxu0 }
 0xb2f   : > { %v3910_v33 = vadd.f32 %v5397_v30, %v7196_v39  ;;  %v5000_v30 = vld [vmem:[#allocation11 + $0xb8] sm:$0xff] }
 0xb30   : > { %v6028_v45 = vpop.f32.mrf.mxu0 }
 0xbb7   : > { %v3985_v46 = vpop.f32.mrf.mxu1 }
 0xbb8   : > { %v3986_v47 = vadd.f32 %v3985_v46, %v6904_v57 }
 0xbb9   : > { %v6033_v48 = vpop.f32.mrf.mxu1 }
 0xbba   : > { %v4217_v49 = vsel %vm1732_vm2, %v3986_v47, -inf }
 0xbbb   : > { %4218 = vmax.xlane.f32.xlu0 %v4217_v49 }
 0xbc7   : > { %v4137_v50 = vpop.f32.mrf.mxu0 }
 0xbc8   : > { %v4138_v51 = vadd.f32 %v4137_v50, %v6904_v57 }
 0xbc9   : > { %v6043_v52 = vpop.f32.mrf.mxu0 }
 0xbca   : > { %v4223_v53 = vsel %vm1732_vm2, %v4138_v51, -inf }
 0xbcb   : > { %4224 = vmax.xlane.f32.xlu0 %v4223_v53 }
 0xbdc   : > { %v4061_v54 = vpop.f32.mrf.mxu1 }
 0xbdd   : > { %v4062_v55 = vadd.f32 %v4061_v54, %v6904_v57 }
 0xbde   : > { %v6038_v56 = vpop.f32.mrf.mxu1 }
 0xbdf   : > { %v4220_v58 = vsel %vm1732_vm2, %v4062_v55, -inf }
 0xbe0   : > { %4221 = vmax.xlane.f32.xlu1 %v4220_v58 }
 0xbe4   : > { %v4213_v59 = vpop.f32.mrf.mxu1 }
 0xbe5   : > { %v4214_v60 = vadd.f32 %v4213_v59, %v6904_v57 }
 0xbe6   : > { %v6048_v61 = vpop.f32.mrf.mxu1 }
 0xbe7   : > { %v4226_v63 = vsel %vm1732_vm2, %v4214_v60, -inf }
 0xbe8   : > { %4227 = vmax.xlane.f32.xlu1 %v4226_v63 }
 0xc44   : > { %v4219_v0 = vpop.xlane.xlu0 %4218 }
 0xc45   : > { %v4229_v1 = vsub.f32 %v3986_v47, %v4219_v0 }
 0xc47   : > { %v4233_v3 = vmul.f32 1.442695, %v4229_v1  ;;  %v5423_v1 = vld [vmem:[%s7403_s12 + $0x1] ss:$0 sm:$0xff] }
 0xc49   : > { %6258 = vpow2.f32 %v4233_v3 }
 0xc54   : > { %v4225_v4 = vpop.xlane.xlu0 %4224 }
 0xc55   : > { %v4231_v5 = vsub.f32 %v4138_v51, %v4225_v4 }
 0xc56   : > { %v6259_v6 = vpop.eup %6258 }
 0xc57   : > { %v4237_v7 = vmul.f32 1.442695, %v4231_v5  ;;  %v4241_v8 = vsel %vm1732_vm2, %v6259_v6, 0.0 }
 0xc58   : > { %4242 = vadd.xlane.f32.xlu0 %v4241_v8 }
 0xc59   : > { %6260 = vpow2.f32 %v4237_v7 }
 0xc66   : > { %v6261_v10 = vpop.eup %6260 }
 0xc67   : > { %v4247_v11 = vsel %vm1732_vm2, %v6261_v10, 0.0 }
 0xc68   : > { %4248 = vadd.xlane.f32.xlu0 %v4247_v11 }
 0xc69   : > { %v4222_v57 = vpop.xlane.xlu1 %4221 }
 0xc6a   : > { %v4230_v12 = vsub.f32 %v4062_v55, %v4222_v57  ;;  %v5431_v57 = vld [vmem:[%s7406_s15 + $0x38] sm:$0xff] }
 0xc6c   : > { %v4235_v13 = vmul.f32 1.442695, %v4230_v12  ;;  %v5429_v12 = vld [vmem:[%s7406_s15 + $0x28] sm:$0xff] }
 0xc6e   : > { %6262 = vpow2.f32 %v4235_v13  ;;  %v5428_v13 = vld [vmem:[%s7406_s15 + $0x20] sm:$0xff] }
 0xc71   : > { %v4228_v14 = vpop.xlane.xlu1 %4227 }
 0xc72   : > { %v4232_v15 = vsub.f32 %v4214_v60, %v4228_v14 }
 0xc74   : > { %v4239_v16 = vmul.f32 1.442695, %v4232_v15 }
 0xc76   : > { %6264 = vpow2.f32 %v4239_v16 }
 0xc7b   : > { %v6263_v17 = vpop.eup %6262 }
 0xc7c   : > { %v4244_v18 = vsel %vm1732_vm2, %v6263_v17, 0.0 }
 0xc7d   : > { %4245 = vadd.xlane.f32.xlu1 %v4244_v18  ;;  %v5426_v18 = vld [vmem:[%s7404_s13 + $0x1] ss:$0 sm:$0xff] }
 0xc83   : > { %v6265_v19 = vpop.eup %6264 }
 0xc84   : > { %v4250_v2 = vsel %vm1732_vm2, %v6265_v19, 0.0 }
 0xc85   : > { %4251 = vadd.xlane.f32.xlu1 %v4250_v2  ;;  %v5427_v2 = vld [vmem:[%s7405_s14 + $0x1] ss:$0 sm:$0xff] }
 0xce1   : > { %v4243_v20 = vpop.xlane.xlu0 %4242 }
 0xce2   : > { %6266 = vrcp.f32 %v4243_v20 }
 0xcef   : > { %v6267_v22 = vpop.eup %6266 }
 0xcf0   : > { %v4254_v23 = vmul.f32 %v6267_v22, %v6259_v6  ;;  %v5008_v22 = vld [vmem:[#allocation11 + $0xf8] sm:$0xff] }
 0xcf1   : > { %v4249_v26 = vpop.xlane.xlu0 %4248 }
 0xcf2   : > { %6268 = vrcp.f32 %v4249_v26  ;;  %6052 = vmatmul.mubr.msk.f32.vlgmr.msra.gmra.mxu0 %vm1732_vm2, %v4254_v23  ;;  %v5007_v23 = vld [vmem:[#allocation11 + $0xf0] sm:$0xff]  ;;  %v5005_v26 = vld [vmem:[#allocation11 + $0xe0] sm:$0xff] }
 0xcf3   : > { %6060 = vmatpush3.msra.mxu0 %v3840_v24  ;;  %6061 = vmatprep.mubr.msk.f32.mxu0 %vm6482_vm1, %v6481_v9  ;;  %v5006_v24 = vld [vmem:[#allocation11 + $0xe8] sm:$0xff] }
 0xcf4   : > { %6069 = vmatprep.subr.mxu0 %v6481_v9 }
 0xcff   : > { %v6269_v27 = vpop.eup %6268 }
 0xd00   : > { %v4258_v28 = vmul.f32 %v6269_v27, %v6261_v10  ;;  %v5004_v27 = vld [vmem:[#allocation11 + $0xd8] sm:$0xff] }
 0xd02   : > { %6062 = vmatmul.mubr.msk.f32.vlgmr.msra.gmra.mxu0 %vm1732_vm2, %v4258_v28  ;;  %v5003_v28 = vld [vmem:[#allocation11 + $0xd0] sm:$0xff] }
 0xd03   : > { %6071 = vmatprep.mubr.msk.f32.mxu0 %vm6482_vm1, %v6481_v9  ;;  %6070 = vmatpush3.msra.mxu0 %v5414_v36  ;;  %v4994_v36 = vld [vmem:[#allocation11 + $0x88] sm:$0xff] }
 0xd04   : > { %6079 = vmatprep.subr.mxu0 %v6481_v9 }
 0xd06   : > { %v4246_v29 = vpop.xlane.xlu1 %4245 }
 0xd07   : > { %6270 = vrcp.f32 %v4246_v29  ;;  %v5002_v29 = vld [vmem:[#allocation11 + $0xc8] sm:$0xff] }
 0xd0e   : > { %v4252_v25 = vpop.xlane.xlu1 %4251 }
 0xd0f   : > { %6272 = vrcp.f32 %v4252_v25  ;;  %v5001_v25 = vld [vmem:[#allocation11 + $0xc0] sm:$0xff] }
 0xd14   : > { %v6271_v31 = vpop.eup %6270 }
 0xd15   : > { %v4256_v32 = vmul.f32 %v6271_v31, %v6263_v17  ;;  %v4999_v31 = vld [vmem:[#allocation11 + $0xb0] sm:$0xff] }
 0xd17   : > { %6057 = vmatmul.mubr.msk.f32.vlgmr.msra.gmra.mxu1 %vm1732_vm2, %v4256_v32  ;;  %v4998_v32 = vld [vmem:[#allocation11 + $0xa8] sm:$0xff] }
 0xd18   : > { %6065 = vmatpush3.msra.mxu1 %v3910_v33  ;;  %6066 = vmatprep.mubr.msk.f32.mxu1 %vm6482_vm1, %v6481_v9  ;;  %v4997_v33 = vld [vmem:[#allocation11 + $0xa0] sm:$0xff] }
 0xd19   : > { %6074 = vmatprep.subr.mxu1 %v6481_v9 }
 0xd1c   : > { %v6273_v34 = vpop.eup %6272 }
 0xd1d   : > { %v4260_v35 = vmul.f32 %v6273_v34, %v6265_v19  ;;  %v4996_v34 = vld [vmem:[#allocation11 + $0x98] sm:$0xff] }
 0xd1f   : > { %6067 = vmatmul.mubr.msk.f32.vlgmr.msra.gmra.mxu1 %vm1732_vm2, %v4260_v35  ;;  %v4995_v35 = vld [vmem:[#allocation11 + $0x90] sm:$0xff] }
 0xd20   : > { %6076 = vmatprep.mubr.msk.f32.mxu1 %vm6482_vm1, %v6481_v9  ;;  %6075 = vmatpush3.msra.mxu1 %v5415_v37  ;;  %v4993_v37 = vld [vmem:[#allocation11 + $0x80] sm:$0xff] }
 0xd21   : > { %6084 = vmatprep.subr.mxu1 %v6481_v9 }
 0xdb2   : > { %v4330_v40 = vpop.f32.mrf.mxu0 }
 0xdb3   : > { %6072 = vmatmul.mubr.msk.f32.vlgmr.msra.gmra.mxu0 %vm1732_vm2, %v4330_v40 }
 0xdb4   : > { %v6053_v41 = vpop.f32.mrf.mxu0  ;;  %6080 = vmatpush3.msra.mxu0 %v5416_v38  ;;  %6081 = vmatprep.mubr.msk.f32.mxu0 %vm6482_vm1, %v6481_v9  ;;  %v5433_v38 = vld [vmem:[%s7451_s3 + $0x1] ss:$0 sm:$0xff] }
 0xdb5   : > { %6089 = vmatprep.subr.mxu0 %v6481_v9 }
 0xdc2   : > { %v4476_v42 = vpop.f32.mrf.mxu0 }
 0xdc3   : > { %6082 = vmatmul.mubr.msk.f32.vlgmr.msra.gmra.mxu0 %vm1732_vm2, %v4476_v42 }
 0xdc4   : > { %v6063_v43 = vpop.f32.mrf.mxu0  ;;  %6097 = vmatprep.mubr.msk.f32.mxu0 %vm6482_vm1, %v6481_v9  ;;  %6090 = vmatpush3.msra.mxu0 %v5431_v57 }
 0xdc5   : > { %6091 = vmatprep.subr.mxu0 %v6481_v9 }
 0xdd7   : > { %v4403_v39 = vpop.f32.mrf.mxu1 }
 0xdd8   : > { %6077 = vmatmul.mubr.msk.f32.vlgmr.msra.gmra.mxu1 %vm1732_vm2, %v4403_v39 }
 0xdd9   : > { %v6058_v45 = vpop.f32.mrf.mxu1  ;;  %6085 = vmatpush3.msra.mxu1 %v5417_v44  ;;  %6086 = vmatprep.mubr.msk.f32.mxu1 %vm6482_vm1, %v6481_v9 }
 0xdda   : > { %6100 = vmatprep.subr.mxu1 %v6481_v9 }
 0xddf   : > { %v4549_v46 = vpop.f32.mrf.mxu1 }
 0xde0   : > { %6087 = vmatmul.mubr.msk.f32.vlgmr.msra.gmra.mxu1 %vm1732_vm2, %v4549_v46 }
 0xde1   : > { %v6068_v47 = vpop.f32.mrf.mxu1  ;;  %6132 = vmatprep.mubr.msk.f32.mxu1 %vm6482_vm1, %v6481_v9  ;;  %6101 = vmatpush3.msra.mxu1 %v5008_v22 }
 0xde2   : > { %6102 = vmatprep.subr.mxu1 %v6481_v9 }
 0xde3   : > { %6103 = vmatpush3.msra.mxu1 %v5007_v23 }
 0xde4   : > { %6104 = vmatprep.subr.mxu1 %v6481_v9 }
 0xde5   : > { %6105 = vmatpush3.msra.mxu1 %v5006_v24 }
 0xde6   : > { %6106 = vmatprep.subr.mxu1 %v6481_v9 }
 0xde7   : > { %6107 = vmatpush3.msra.mxu1 %v5005_v26 }
 0xde8   : > { %6108 = vmatprep.subr.mxu1 %v6481_v9 }
 0xde9   : > { %6109 = vmatpush3.msra.mxu1 %v5004_v27 }
 0xdea   : > { %6110 = vmatprep.subr.mxu1 %v6481_v9 }
 0xdeb   : > { %6111 = vmatpush3.msra.mxu1 %v5003_v28 }
 0xdec   : > { %6112 = vmatprep.subr.mxu1 %v6481_v9 }
 0xded   : > { %6113 = vmatpush3.msra.mxu1 %v5002_v29 }
 0xdee   : > { %6114 = vmatprep.subr.mxu1 %v6481_v9 }
 0xdef   : > { %6115 = vmatpush3.msra.mxu1 %v5001_v25 }
 0xdf0   : > { %6116 = vmatprep.subr.mxu1 %v6481_v9 }
 0xdf1   : > { %6117 = vmatpush3.msra.mxu1 %v5000_v30 }
 0xdf2   : > { %6118 = vmatprep.subr.mxu1 %v6481_v9 }
 0xdf3   : > { %6119 = vmatpush3.msra.mxu1 %v4999_v31 }
 0xdf4   : > { %6120 = vmatprep.subr.mxu1 %v6481_v9 }
 0xdf5   : > { %6121 = vmatpush3.msra.mxu1 %v4998_v32 }
 0xdf6   : > { %6122 = vmatprep.subr.mxu1 %v6481_v9 }
 0xdf7   : > { %6123 = vmatpush3.msra.mxu1 %v4997_v33 }
 0xdf8   : > { %6124 = vmatprep.subr.mxu1 %v6481_v9 }
 0xdf9   : > { %6125 = vmatpush3.msra.mxu1 %v4996_v34 }
 0xdfa   : > { %6126 = vmatprep.subr.mxu1 %v6481_v9 }
 0xdfb   : > { %6127 = vmatpush3.msra.mxu1 %v4995_v35 }
 0xdfc   : > { %6128 = vmatprep.subr.mxu1 %v6481_v9 }
 0xdfd   : > { %6129 = vmatpush3.msra.mxu1 %v4994_v36 }
 0xdfe   : > { %6130 = vmatprep.subr.mxu1 %v6481_v9 }
 0xdff   : > { %6131 = vmatpush3.msra.mxu1 %v4993_v37 }
 0xe73   : > { %v4627_v48 = vpop.f32.mrf.mxu0 }
 0xe74   : > { %v4850_v55 = vsel %vm728_vm0, %v4627_v48, 0.0 }
 0xe75   : > { %v6073_v49 = vpop.f32.mrf.mxu0 }
 0xe76   : > { %v5437_v49 = vld [vmem:[%s7409_s18 + $0x1] ss:$0 sm:$0xff] }
 0xe83   : > { %v4773_v50 = vpop.f32.mrf.mxu0 }
 0xe84   : > { %v4853_v58 = vsel %vm728_vm0, %v4773_v50, 0.0 }
 0xe85   : > { %v6083_v51 = vpop.f32.mrf.mxu0 }
 0xe98   : > { %v4700_v52 = vpop.f32.mrf.mxu1 }
 0xe99   : > { %v4851_v53 = vsel %vm728_vm0, %v4700_v52, 0.0 }
 0xe9a   : > { %v6078_v54 = vpop.f32.mrf.mxu1  ;;  %v4852_v56 = vadd.f32 %v4851_v53, %v4850_v55 }
 0xe9c   : > { %v4854_v60 = vadd.f32 %v4853_v58, %v4852_v56 }
 0xea0   : > { %v4846_v59 = vpop.f32.mrf.mxu1 }
 0xea1   : > { %v4855_v61 = vsel %vm728_vm0, %v4846_v59, 0.0 }
 0xea2   : > { %v4856_v63 = vadd.f32 %v4855_v61, %v4854_v60  ;;  %v6088_v0 = vpop.f32.mrf.mxu1  ;;  %v5114_v61 = vld [vmem:[%s7412_s21 + $0x18] sm:$0xff] }
 0xea3   : > { %v5112_v0 = vld [vmem:[%s7412_s21 + $0x8] sm:$0xff] }
 0xea4   : > { %v4857_v3 = vadd.f32 %v4856_v63, %v7032_v62  ;;  %v5430_v62 = vld [vmem:[%s7406_s15 + $0x30] sm:$0xff] }
 0xea5   : > { %6092 = vmatpush3.msra.mxu0 %v5430_v62  ;;  %v5113_v63 = vld [vmem:[%s7412_s21 + $0x10] sm:$0xff] }
 0xea6   : > { %v7268_v4 = vadd.f32 %v5423_v1, %v4857_v3  ;;  %6093 = vmatprep.subr.mxu0 %v6481_v9  ;;  %v5111_v1 = vld [vmem:[%s7412_s21] sm:$0xff] }
 0xea7   : > { %6094 = vmatpush3.msra.mxu0 %v5429_v12 }
 0xea8   : > { %v4871_v5 = vsel %vm728_vm0, %v7268_v4, 0.0  ;;  %6095 = vmatprep.subr.mxu0 %v6481_v9 }
 0xea9   : > { %4872 = vadd.xlane.f32.xlu0 %v4871_v5  ;;  %6096 = vmatpush3.msra.mxu0 %v5428_v13 }
 0xeaa   : > { %6135 = vmatprep.subr.mxu0 %v6481_v9 }
 0xf32   : > { %v4873_v6 = vpop.xlane.xlu0 %4872 }
 0xf33   : > { %v4874_v7 = vmul.f32 0.03125, %v4873_v6 }
 0xf35   : > { %v4875_v8 = vsub.f32 %v7268_v4, %v4874_v7  ;;  %v5093_v7 = vld [vmem:[%s7410_s19] sm:$0x1] }
 0xf37   : > { %v4876_v10 = vmul.f32 %v4875_v8, %v4875_v8 }
 0xf39   : > { %v4877_v11 = vsel %vm728_vm0, %v4876_v10, 0.0  ;;  %v5094_v10 = vld [vmem:[%s7411_s20] sm:$0x1] }
 0xf3a   : > { %4878 = vadd.xlane.f32.xlu1 %v4877_v11 }
 0xfc3   : > { %v4879_v14 = vpop.xlane.xlu1 %4878 }
 0xfc4   : > { %v4880_v15 = vmul.f32 0.03125, %v4879_v14 }
 0xfc6   : > { %v4881_v16 = vadd.f32 1e-05, %v4880_v15 }
 0xfc8   : > { %6274 = vrsqrt.f32 %v4881_v16 }
 0xfd5   : > { %v6275_v17 = vpop.eup %6274 }
 0xfd6   : > { %v4883_v19 = vmul.f32 %v6275_v17, %v4875_v8 }
 0xfd8   : > { %v4890_v20 = vmul.f32 %v5426_v18, %v4883_v19 }
 0xfda   : > { %v4897_v21 = vadd.f32 %v5427_v2, %v4890_v20 }
 0xfdc   : > { %6098 = vmatmul.mubr.msk.f32.vlgmr.msra.gmra.mxu0 %vm728_vm0, %v4897_v21 }
 0xfdd   : > { %6143 = vmatprep.mubr.msk.f32.mxu0 %vm6482_vm1, %v6481_v9  ;;  %6136 = vmatpush3.msra.mxu0 %v5114_v61 }
 0xfde   : > { %6137 = vmatprep.subr.mxu0 %v6481_v9 }
 0xfdf   : > { %6138 = vmatpush3.msra.mxu0 %v5113_v63 }
 0xfe0   : > { %6139 = vmatprep.subr.mxu0 %v6481_v9 }
 0xfe1   : > { %6140 = vmatpush3.msra.mxu0 %v5112_v0 }
 0xfe2   : > { %6141 = vmatprep.subr.mxu0 %v6481_v9 }
 0xfe3   : > { %6142 = vmatpush3.msra.mxu0 %v5111_v1 }
0x109c   : > { %v4980_v40 = vpop.f32.mrf.mxu0 }
0x109d   : > { %v4981_v41 = vadd.f32 %v5433_v38, %v4980_v40 }
0x109e   : > { %v6099_v42 = vpop.f32.mrf.mxu0 }
0x109f   : > { %v5435_v43 = vmul.f32 -1.702, %v4981_v41 }
0x10a1   : > { %v4986_v44 = vmul.f32 1.442695, %v5435_v43 }
0x10a3   : > { %6276 = vpow2.f32 %v4986_v44 }
0x10b0   : > { %v6277_v39 = vpop.eup %6276 }
0x10b1   : > { %v4988_v45 = vadd.f32 1.0, %v6277_v39 }
0x10b3   : > { %6278 = vrcp.f32 %v4988_v45 }
0x10c0   : > { %v6279_v46 = vpop.eup %6278 }
0x10c1   : > { %v4991_v47 = vmul.f32 %v6279_v46, %v4981_v41 }
0x10c3   : > { %6133 = vmatmul.mubr.f32.vlgmr.msra.gmra.mxu1 %v4991_v47 }
0x1183   : > { %v5075_v48 = vpop.f32.mrf.mxu1 }
0x1184   : > { %v5079_v50 = vadd.f32 %v5075_v48, %v7268_v4 }
0x1185   : > { %v6134_v51 = vpop.f32.mrf.mxu1 }
0x1186   : > { %v5088_v52 = vadd.f32 %v5437_v49, %v5079_v50 }
0x1188   : > { %5089 = vst.msk [vmem:[#allocation2] sm:$0xff] %vm728_vm0, %v5088_v52 }
0x118f   : > { %v5092_v53 = vld [vmem:[%s5091_s1] sm:$0x1]  ;;  %s5203_s1 = sshll.u32 %s712_s26, 4  ;;  %s7352_s1 = int_to_ptr.vmem [resolvable:$true] %s5203_s1 }
0x1190   : > { %v5096_v54 = vsel %vm5095_vm4, %v5092_v53, 0.0  ;;  %s6398_s4 = scalar_lea.vmem %s7352_s1, 16  ;;  %p6405_p9 = scmp.lt.s32.totalorder %s7352_s1, %s6403_s24 }
0x1191   : > { %5097 = vadd.xlane.f32.xlu0 %v5096_v54  ;;  %p6399_p0 = scmp.ne.s32.totalorder %s7352_s1, %s6398_s4  ;;  %p6406_p12 = scmp.lt.s32.totalorder %s6404_s6, %s6398_s4 }
0x1193   : > { %p6400_p3 = pnand %p6399_p0, %p6641_p10  ;;  %p6407_p13 = por %p6406_p12, %p6405_p9 }
0x1195   : > { %p6401_p4 = pneg %p6400_p3 }
0x1197   : > { %p6408_p2 = pnand %p6407_p13, %p6401_p4 }
0x121a   : > { %v5098_v55 = vpop.xlane.xlu0 %5097 }
0x121b   : > { %v5099_v56 = vmul.f32 0.03125, %v5098_v55 }
0x121d   : > { %v5100_v58 = vsub.f32 %v5092_v53, %v5099_v56 }
0x121f   : > { %v5101_v59 = vmul.f32 %v5100_v58, %v5100_v58 }
0x1221   : > { %v5102_v60 = vsel %vm5095_vm4, %v5101_v59, 0.0 }
0x1222   : > { %5103 = vadd.xlane.f32.xlu1 %v5102_v60 }
0x12ab   : > { %v5104_v3 = vpop.xlane.xlu1 %5103 }
0x12ac   : > { %v5105_v4 = vmul.f32 0.03125, %v5104_v3 }
0x12ae   : > { %v5106_v5 = vadd.f32 1e-05, %v5105_v4 }
0x12b0   : > { %6280 = vrsqrt.f32 %v5106_v5 }
0x12bd   : > { %v6281_v6 = vpop.eup %6280 }
0x12be   : > { %v5108_v8 = vmul.f32 %v6281_v6, %v5100_v58 }
0x12c0   : > { %v5109_v11 = vmul.f32 %v5108_v8, %v5093_v7 }
0x12c2   : > { %v5110_v57 = vadd.f32 %v5109_v11, %v5094_v10 }
0x12c4   : > { %6144 = vmatmul.mubr.msk.f32.vlgmr.msra.gmra.mxu0 %vm728_vm0, %v5110_v57 }
0x1384   : > { %v5184_v9 = vpop.f32.mrf.mxu0 }
0x1385   : > { %5189 = vst.msk [vmem:[%s712_s26] sm:$0x1] %vm5188_vm5, %v5184_v9 }
0x1386   : > { %v6145_v62 = vpop.f32.mrf.mxu0 }
0x1387   : > { %6411 = shalt.err (!%p6408_p2)
}
0x1388   : > { %s6412_s3 = scalar_lea.hbm %s7350_s2, 16  ;;  %s6416_s26 = scalar_lea.hbm %s7413_s22, 32 }
0x1389   : > { %p6413_p5 = scmp.ne.s32.totalorder %s7350_s2, %s6412_s3  ;;  %p6417_p8 = scmp.lt.s32.totalorder %s7350_s2, %s7413_s22 }
0x138a   : > { %p6418_p1 = scmp.lt.s32.totalorder %s6416_s26, %s6412_s3 }
0x138b   : > { %p6414_p7 = pnand %p6413_p5, %p6641_p10 }
0x138c   : > { %p6419_p0 = por %p6418_p1, %p6417_p8 }
0x138d   : > { %p6415_p6 = pneg %p6414_p7 }
0x138f   : > { %p6420_p3 = pnand %p6419_p0, %p6415_p6 }
0x1391   : > { %6423 = shalt.err (!%p6420_p3)
}
0x1392   : > { %6162 = dma.vmem_to_hbm [thread:$0]  (%p6641_p10), %s7352_s1, 16, %s7350_s2, %s5191_s28  }
0x1393 PF: > { %s7452_s4 = sld [smem:[#allocation19_spill]]  ;;  %p6189_p4 = scmp.ge.s32.totalorder %s6472_s5, 2 }
0x1395   : > { %p6178_p9 = pnand %p6189_p4, %p6645_p11 }
0x1397   : > { %p6179_p12 = pneg %p6178_p9 }
0x1399   : > { %s5215_s6 = sand.u32 1, %s7452_s4  }
0x139a   : > { %s5216_s7 = scalar_lea.sflag [#allocation7], %s5215_s6 }
0x139b   : > { %6455 = dma.done.wait (%p6179_p12), %s5216_s7, 16  }
0x139c   : > { %6457 = vsyncadd (%p6179_p12), %s5216_s7, 4294967280  ;;  %s7454_s5 = sld [smem:[#allocation21_spill]]  ;;  %s7457_s0 = smov %s6464_s23 }
0x139d   : > { %s7455_s3 = sld [smem:[#allocation20_spill]] }
0x139e   : > { %s7456_s1 = sld [smem:[#allocation22_spill]] }
0x13a2   : > { %p41_p13 = scmp.ge.s32.totalorder %s7454_s5, 4  }
0x13a3   : > { %s7458_s23 = smov %s7455_s3 }
0x13a4   :  { %43 = sbr.rel (!%p41_p13) target bundleno = 36 (0x24), region = 173 }
0x13a9   :  { %5220 = vsyncpa [#allocation6], 1 }
0x13aa   :  { %5222 = vsyncpa [#allocation6 + $0x1], 1 }
0x13ab   :  { %5223 = vsyncpa [#allocation9], 1 }
0x13ac   :  { %5224 = vsyncpa [#allocation12], 1 }
0x13ad   :  { %5225 = vsyncpa [#allocation7], 1 }
0x13ae   :  { %5227 = vsyncpa [#allocation7 + $0x1], 1 }

</bundles_post_ra>
